<compile_context>
chip_gen: v7x
topology: tpu7x:2x2x1
jax: 0.10.0
libtpu: 0.0.40
codegen_flags: <defaults>
</compile_context>

<pallas_src>
import jax
import jax.numpy as jnp
import numpy as np
from jax import lax
from jax.experimental import pallas as pl
from jax.experimental.pallas import tpu as pltpu

# small, deterministic problem sizes
BATCH = 2
SEQ = 8
TOKENS = BATCH * SEQ            # 16 rows -> lane-dense [16, 32] slab
D_MODEL = 32
N_HEADS = 4
D_K = D_MODEL // N_HEADS
D_FF = 64
N_LAYERS = 2
EPS = 1e-6
NEG_INF = -1e30


def _layernorm(x, a, b):
    """Matches the PyTorch LayerNorm in the module: unbiased std, eps on std."""
    d = x.shape[-1]
    mean = jnp.mean(x, axis=-1, keepdims=True)
    diff = x - mean
    var = jnp.sum(diff * diff, axis=-1, keepdims=True) * (1.0 / (d - 1))  # unbiased
    inv = pl.reciprocal(jnp.sqrt(var) + EPS)      # exact; one reciprocal + multiply
    return a * (diff * inv) + b


def encoder_kernel(x_ref, bias_ref,
                   w_qkv_ref, b_qkv_ref, wo_ref,
                   w1_ref, b1_ref, w2_ref,
                   vecs_ref, fnorm_ref,
                   o_ref):
    """Single invocation: all layers unrolled, all weights resident in VMEM."""
    x = x_ref[...]                                   # [TOKENS, D_MODEL]
    bias = bias_ref[...]                             # [TOKENS, TOKENS] block-diag
    scale = 1.0 / jnp.sqrt(jnp.float32(D_K))

    for l in range(N_LAYERS):                        # static unroll
        vecs = vecs_ref[l]                           # [6, D_MODEL]
        ln1_a, ln1_b = vecs[0:1], vecs[1:2]
        ln2_a, ln2_b = vecs[2:3], vecs[3:4]
        bo, b2 = vecs[4:5], vecs[5:6]

        # ---- sublayer 0: pre-norm multi-head self-attention + residual ----
        y = _layernorm(x, ln1_a, ln1_b)
        # one fused [16,32] x [32,96] MXU matmul for Q, K, V
        qkv = jnp.dot(y, w_qkv_ref[l],
                      preferred_element_type=jnp.float32) + b_qkv_ref[l]
        q = qkv[:, 0:D_MODEL] * scale                # scale folded into q
        k = qkv[:, D_MODEL:2 * D_MODEL]
        v = qkv[:, 2 * D_MODEL:3 * D_MODEL]

        # heads are only viewed here (lane slices); batch separation via
        # the additive block-diagonal bias.
        # TODO(synk): external attention-mask path not wired in (forward uses mask=None).
        o_heads = []
        for h in range(N_HEADS):                     # static unroll of 4
            sl = slice(h * D_K, (h + 1) * D_K)
            s = lax.dot_general(q[:, sl], k[:, sl],
                                (((1,), (1,)), ((), ())),
                                preferred_element_type=jnp.float32)   # [T, T]
            s = s + bias
            s = s - jnp.max(s, axis=-1, keepdims=True)
            p = jnp.exp(s)
            p = p * pl.reciprocal(jnp.sum(p, axis=-1, keepdims=True))
            o_heads.append(jnp.dot(p, v[:, sl],
                                   preferred_element_type=jnp.float32))  # [T, D_K]
        o_cat = jnp.concatenate(o_heads, axis=-1)    # [T, D_MODEL]
        # single dense output projection [16,32] x [32,32]
        attn = jnp.dot(o_cat, wo_ref[l], preferred_element_type=jnp.float32) + bo
        x = x + attn                                 # dropout == identity

        # ---- sublayer 1: pre-norm position-wise FFN + residual ----
        y2 = _layernorm(x, ln2_a, ln2_b)
        hdn = jnp.dot(y2, w1_ref[l], preferred_element_type=jnp.float32) + b1_ref[l]
        hdn = jnp.maximum(hdn, 0.0)
        ff = jnp.dot(hdn, w2_ref[l], preferred_element_type=jnp.float32) + b2
        x = x + ff

    # ---- final Encoder.norm: one lane-dense [TOKENS, D_MODEL] store ----
    fn = fnorm_ref[...]                              # [2, D_MODEL]
    o_ref[...] = _layernorm(x, fn[0:1], fn[1:2])


def make_params(key):
    ks = jax.random.split(key, 16)
    s = 0.1
    p = {
        "ln1_a": jnp.ones((N_LAYERS, D_MODEL), jnp.float32),
        "ln1_b": jnp.zeros((N_LAYERS, D_MODEL), jnp.float32),
        "wq": s * jax.random.normal(ks[0], (N_LAYERS, D_MODEL, D_MODEL), jnp.float32),
        "bq": s * jax.random.normal(ks[1], (N_LAYERS, D_MODEL), jnp.float32),
        "wk": s * jax.random.normal(ks[2], (N_LAYERS, D_MODEL, D_MODEL), jnp.float32),
        "bk": s * jax.random.normal(ks[3], (N_LAYERS, D_MODEL), jnp.float32),
        "wv": s * jax.random.normal(ks[4], (N_LAYERS, D_MODEL, D_MODEL), jnp.float32),
        "bv": s * jax.random.normal(ks[5], (N_LAYERS, D_MODEL), jnp.float32),
        "wo": s * jax.random.normal(ks[6], (N_LAYERS, D_MODEL, D_MODEL), jnp.float32),
        "bo": s * jax.random.normal(ks[7], (N_LAYERS, D_MODEL), jnp.float32),
        "ln2_a": jnp.ones((N_LAYERS, D_MODEL), jnp.float32),
        "ln2_b": jnp.zeros((N_LAYERS, D_MODEL), jnp.float32),
        "w1": s * jax.random.normal(ks[8], (N_LAYERS, D_MODEL, D_FF), jnp.float32),
        "b1": s * jax.random.normal(ks[9], (N_LAYERS, D_FF), jnp.float32),
        "w2": s * jax.random.normal(ks[10], (N_LAYERS, D_FF, D_MODEL), jnp.float32),
        "b2": s * jax.random.normal(ks[11], (N_LAYERS, D_MODEL), jnp.float32),
        "fa": jnp.ones((1, D_MODEL), jnp.float32),
        "fb": jnp.zeros((1, D_MODEL), jnp.float32),
    }
    return p


@jax.jit
def encoder_forward(x, params):
    # lane-dense activation slab [TOKENS, D_MODEL]
    x2d = x.reshape(TOKENS, D_MODEL)

    # block-diagonal additive bias keeping batches separate (built outside kernel)
    tok_batch = jnp.arange(TOKENS) // SEQ
    bias = jnp.where(tok_batch[:, None] == tok_batch[None, :], 0.0, NEG_INF)
    bias = bias.astype(jnp.float32)

    # parameter packing done in the wrapper (free):
    w_qkv = jnp.concatenate([params["wq"], params["wk"], params["wv"]],
                            axis=-1)                                     # [L, 32, 96]
    b_qkv = jnp.concatenate([params["bq"], params["bk"], params["bv"]],
                            axis=-1).reshape(N_LAYERS, 1, 3 * D_MODEL)   # [L, 1, 96]
    b1 = params["b1"].reshape(N_LAYERS, 1, D_FF)                         # [L, 1, 64]
    vecs = jnp.stack([params["ln1_a"], params["ln1_b"],
                      params["ln2_a"], params["ln2_b"],
                      params["bo"], params["b2"]], axis=1)               # [L, 6, 32]
    fnorm = jnp.concatenate([params["fa"], params["fb"]], axis=0)        # [2, 32]

    inputs = (x2d, bias,
              w_qkv, b_qkv, params["wo"],
              params["w1"], b1, params["w2"],
              vecs, fnorm)

    vmem = pl.BlockSpec(memory_space=pltpu.MemorySpace.VMEM)
    out = pl.pallas_call(
        encoder_kernel,
        out_shape=jax.ShapeDtypeStruct((TOKENS, D_MODEL), jnp.float32),
        # grid=() : single invocation; everything (~0.17 MiB of params) resident
        # in VMEM, so there is no per-step DMA / double-buffer bookkeeping.
        in_specs=[vmem] * len(inputs),
        out_specs=vmem,
    )(*inputs)
    return out.reshape(BATCH, SEQ, D_MODEL)


def encoder_reference(x, p):
    """Pure-JAX reference mirroring the PyTorch forward exactly."""
    def ln(z, a, b):
        d = z.shape[-1]
        mean = jnp.mean(z, axis=-1, keepdims=True)
        var = jnp.sum((z - mean) ** 2, axis=-1, keepdims=True) / (d - 1)
        return a * (z - mean) / (jnp.sqrt(var) + EPS) + b

    for l in range(N_LAYERS):
        y = ln(x, p["ln1_a"][l], p["ln1_b"][l])
        q = y @ p["wq"][l] + p["bq"][l]
        k = y @ p["wk"][l] + p["bk"][l]
        v = y @ p["wv"][l] + p["bv"][l]
        qh = q.reshape(BATCH, SEQ, N_HEADS, D_K).transpose(0, 2, 1, 3)
        kh = k.reshape(BATCH, SEQ, N_HEADS, D_K).transpose(0, 2, 1, 3)
        vh = v.reshape(BATCH, SEQ, N_HEADS, D_K).transpose(0, 2, 1, 3)
        scores = qh @ kh.transpose(0, 1, 3, 2) / jnp.sqrt(jnp.float32(D_K))
        attn = jax.nn.softmax(scores, axis=-1)
        o = (attn @ vh).transpose(0, 2, 1, 3).reshape(BATCH, SEQ, D_MODEL)
        x = x + (o @ p["wo"][l] + p["bo"][l])
        y2 = ln(x, p["ln2_a"][l], p["ln2_b"][l])
        x = x + (jnp.maximum(y2 @ p["w1"][l] + p["b1"][l], 0.0) @ p["w2"][l] + p["b2"][l])
    return ln(x, p["fa"][0], p["fb"][0])


if __name__ == "__main__":
    key = jax.random.PRNGKey(0)
    kx, kp = jax.random.split(key)
    x = jax.random.normal(kx, (BATCH, SEQ, D_MODEL), jnp.float32)
    params = make_params(kp)

    out = encoder_forward(x, params)
    out = jax.block_until_ready(out)

    ref = encoder_reference(x, params)
    np.testing.assert_allclose(np.asarray(out), np.asarray(ref), rtol=1e-5, atol=1e-5)

    print("KERNEL_OK")
</pallas_src>

<mosaic_0001>
module attributes {stable_mosaic.version = 11 : i64} {
  func.func @encoder_kernel(%arg0: memref<16x32xf32, #tpu.memory_space<vmem>>, %arg1: memref<16x16xf32, #tpu.memory_space<vmem>>, %arg2: memref<2x32x96xf32, #tpu.memory_space<vmem>>, %arg3: memref<2x1x96xf32, #tpu.memory_space<vmem>>, %arg4: memref<2x32x32xf32, #tpu.memory_space<vmem>>, %arg5: memref<2x32x64xf32, #tpu.memory_space<vmem>>, %arg6: memref<2x1x64xf32, #tpu.memory_space<vmem>>, %arg7: memref<2x64x32xf32, #tpu.memory_space<vmem>>, %arg8: memref<2x6x32xf32, #tpu.memory_space<vmem>>, %arg9: memref<2x32xf32, #tpu.memory_space<vmem>>, %arg10: memref<16x32xf32, #tpu.memory_space<vmem>>) attributes {dimension_semantics = [], scalar_prefetch = 0 : i64, scratch_operands = 0 : i64, tpu.core_type = #tpu.core_type<tc>} {
    %c0 = arith.constant 0 : index
    %c0_0 = arith.constant 0 : index
    %0 = vector.load %arg0[%c0, %c0_0] : memref<16x32xf32, #tpu.memory_space<vmem>>, vector<16x32xf32>
    %c0_1 = arith.constant 0 : index
    %c0_2 = arith.constant 0 : index
    %1 = vector.load %arg1[%c0_1, %c0_2] : memref<16x16xf32, #tpu.memory_space<vmem>>, vector<16x16xf32>
    %cst = arith.constant 8.000000e+00 : f32
    %2 = math.sqrt %cst : f32
    %cst_3 = arith.constant 1.000000e+00 : f32
    %3 = arith.divf %cst_3, %2 : f32
    %c0_4 = arith.constant 0 : index
    %c0_5 = arith.constant 0 : index
    %c0_6 = arith.constant 0 : index
    %4 = vector.load %arg8[%c0_4, %c0_5, %c0_6] : memref<2x6x32xf32, #tpu.memory_space<vmem>>, vector<1x6x32xf32>
    %5 = vector.shape_cast %4 : vector<1x6x32xf32> to vector<6x32xf32>
    %6 = vector.extract_strided_slice %5 {offsets = [0, 0], sizes = [1, 32], strides = [1, 1]} : vector<6x32xf32> to vector<1x32xf32>
    %7 = vector.extract_strided_slice %5 {offsets = [1, 0], sizes = [1, 32], strides = [1, 1]} : vector<6x32xf32> to vector<1x32xf32>
    %8 = vector.extract_strided_slice %5 {offsets = [2, 0], sizes = [1, 32], strides = [1, 1]} : vector<6x32xf32> to vector<1x32xf32>
    %9 = vector.extract_strided_slice %5 {offsets = [3, 0], sizes = [1, 32], strides = [1, 1]} : vector<6x32xf32> to vector<1x32xf32>
    %10 = vector.extract_strided_slice %5 {offsets = [4, 0], sizes = [1, 32], strides = [1, 1]} : vector<6x32xf32> to vector<1x32xf32>
    %11 = vector.extract_strided_slice %5 {offsets = [5, 0], sizes = [1, 32], strides = [1, 1]} : vector<6x32xf32> to vector<1x32xf32>
    %cst_7 = arith.constant dense<0.000000e+00> : vector<16xf32>
    %12 = vector.multi_reduction <add>, %0, %cst_7 [1] : vector<16x32xf32> to vector<16xf32>
    %13 = vector.shape_cast %12 : vector<16xf32> to vector<16x1xf32>
    %cst_8 = arith.constant 3.200000e+01 : f32
    %14 = vector.broadcast %cst_8 : f32 to vector<16x1xf32>
    %15 = arith.divf %13, %14 : vector<16x1xf32>
    %16 = vector.broadcast %15 : vector<16x1xf32> to vector<16x32xf32>
    %17 = arith.subf %0, %16 : vector<16x32xf32>
    %18 = arith.mulf %17, %17 : vector<16x32xf32>
    %cst_9 = arith.constant dense<0.000000e+00> : vector<16xf32>
    %19 = vector.multi_reduction <add>, %18, %cst_9 [1] : vector<16x32xf32> to vector<16xf32>
    %20 = vector.shape_cast %19 : vector<16xf32> to vector<16x1xf32>
    %cst_10 = arith.constant 0.0322580636 : f32
    %21 = vector.broadcast %cst_10 : f32 to vector<16x1xf32>
    %22 = arith.mulf %20, %21 : vector<16x1xf32>
    %23 = math.sqrt %22 : vector<16x1xf32>
    %cst_11 = arith.constant 9.99999997E-7 : f32
    %24 = vector.broadcast %cst_11 : f32 to vector<16x1xf32>
    %25 = arith.addf %23, %24 : vector<16x1xf32>
    %26 = tpu.reciprocal %25 : vector<16x1xf32> -> vector<16x1xf32>
    %27 = vector.broadcast %26 : vector<16x1xf32> to vector<16x32xf32>
    %28 = arith.mulf %17, %27 : vector<16x32xf32>
    %29 = vector.broadcast %6 : vector<1x32xf32> to vector<16x32xf32>
    %30 = arith.mulf %29, %28 : vector<16x32xf32>
    %31 = vector.broadcast %7 : vector<1x32xf32> to vector<16x32xf32>
    %32 = arith.addf %30, %31 : vector<16x32xf32>
    %c0_12 = arith.constant 0 : index
    %c0_13 = arith.constant 0 : index
    %c0_14 = arith.constant 0 : index
    %33 = vector.load %arg2[%c0_12, %c0_13, %c0_14] : memref<2x32x96xf32, #tpu.memory_space<vmem>>, vector<1x32x96xf32>
    %34 = vector.shape_cast %33 : vector<1x32x96xf32> to vector<32x96xf32>
    %cst_15 = arith.constant dense<0.000000e+00> : vector<16x96xf32>
    %35 = tpu.matmul %32, %34, %cst_15 {dimension_numbers = #tpu.dot_dimension_numbers<[1], [0], [0], [1], [0, 0, 1, 1], [], []>} : vector<16x32xf32>, vector<32x96xf32>, vector<16x96xf32> -> vector<16x96xf32>
    %c0_16 = arith.constant 0 : index
    %c0_17 = arith.constant 0 : index
    %c0_18 = arith.constant 0 : index
    %36 = vector.load %arg3[%c0_16, %c0_17, %c0_18] : memref<2x1x96xf32, #tpu.memory_space<vmem>>, vector<1x1x96xf32>
    %37 = vector.shape_cast %36 : vector<1x1x96xf32> to vector<1x96xf32>
    %38 = vector.broadcast %37 : vector<1x96xf32> to vector<16x96xf32>
    %39 = arith.addf %35, %38 : vector<16x96xf32>
    %40 = vector.extract_strided_slice %39 {offsets = [0, 0], sizes = [16, 32], strides = [1, 1]} : vector<16x96xf32> to vector<16x32xf32>
    %41 = vector.broadcast %3 : f32 to vector<16x32xf32>
    %42 = arith.mulf %40, %41 : vector<16x32xf32>
    %43 = vector.extract_strided_slice %39 {offsets = [0, 32], sizes = [16, 32], strides = [1, 1]} : vector<16x96xf32> to vector<16x32xf32>
    %44 = vector.extract_strided_slice %39 {offsets = [0, 64], sizes = [16, 32], strides = [1, 1]} : vector<16x96xf32> to vector<16x32xf32>
    %45 = vector.extract_strided_slice %42 {offsets = [0, 0], sizes = [16, 8], strides = [1, 1]} : vector<16x32xf32> to vector<16x8xf32>
    %46 = vector.extract_strided_slice %43 {offsets = [0, 0], sizes = [16, 8], strides = [1, 1]} : vector<16x32xf32> to vector<16x8xf32>
    %cst_19 = arith.constant dense<0.000000e+00> : vector<16x16xf32>
    %47 = tpu.matmul %45, %46, %cst_19 {dimension_numbers = #tpu.dot_dimension_numbers<[1], [1], [0], [0], [0, 0, 1, 0], [], []>} : vector<16x8xf32>, vector<16x8xf32>, vector<16x16xf32> -> vector<16x16xf32>
    %48 = arith.addf %47, %1 : vector<16x16xf32>
    %cst_20 = arith.constant dense<0xFF800000> : vector<16xf32>
    %49 = vector.multi_reduction <maximumf>, %48, %cst_20 [1] : vector<16x16xf32> to vector<16xf32>
    %50 = vector.shape_cast %49 : vector<16xf32> to vector<16x1xf32>
    %51 = vector.broadcast %50 : vector<16x1xf32> to vector<16x16xf32>
    %52 = arith.subf %48, %51 : vector<16x16xf32>
    %53 = math.exp %52 : vector<16x16xf32>
    %cst_21 = arith.constant dense<0.000000e+00> : vector<16xf32>
    %54 = vector.multi_reduction <add>, %53, %cst_21 [1] : vector<16x16xf32> to vector<16xf32>
    %55 = vector.shape_cast %54 : vector<16xf32> to vector<16x1xf32>
    %56 = tpu.reciprocal %55 : vector<16x1xf32> -> vector<16x1xf32>
    %57 = vector.broadcast %56 : vector<16x1xf32> to vector<16x16xf32>
    %58 = arith.mulf %53, %57 : vector<16x16xf32>
    %59 = vector.extract_strided_slice %44 {offsets = [0, 0], sizes = [16, 8], strides = [1, 1]} : vector<16x32xf32> to vector<16x8xf32>
    %cst_22 = arith.constant dense<0.000000e+00> : vector<16x8xf32>
    %60 = tpu.matmul %58, %59, %cst_22 {dimension_numbers = #tpu.dot_dimension_numbers<[1], [0], [0], [1], [0, 0, 1, 1], [], []>} : vector<16x16xf32>, vector<16x8xf32>, vector<16x8xf32> -> vector<16x8xf32>
    %61 = vector.extract_strided_slice %42 {offsets = [0, 8], sizes = [16, 8], strides = [1, 1]} : vector<16x32xf32> to vector<16x8xf32>
    %62 = vector.extract_strided_slice %43 {offsets = [0, 8], sizes = [16, 8], strides = [1, 1]} : vector<16x32xf32> to vector<16x8xf32>
    %cst_23 = arith.constant dense<0.000000e+00> : vector<16x16xf32>
    %63 = tpu.matmul %61, %62, %cst_23 {dimension_numbers = #tpu.dot_dimension_numbers<[1], [1], [0], [0], [0, 0, 1, 0], [], []>} : vector<16x8xf32>, vector<16x8xf32>, vector<16x16xf32> -> vector<16x16xf32>
    %64 = arith.addf %63, %1 : vector<16x16xf32>
    %cst_24 = arith.constant dense<0xFF800000> : vector<16xf32>
    %65 = vector.multi_reduction <maximumf>, %64, %cst_24 [1] : vector<16x16xf32> to vector<16xf32>
    %66 = vector.shape_cast %65 : vector<16xf32> to vector<16x1xf32>
    %67 = vector.broadcast %66 : vector<16x1xf32> to vector<16x16xf32>
    %68 = arith.subf %64, %67 : vector<16x16xf32>
    %69 = math.exp %68 : vector<16x16xf32>
    %cst_25 = arith.constant dense<0.000000e+00> : vector<16xf32>
    %70 = vector.multi_reduction <add>, %69, %cst_25 [1] : vector<16x16xf32> to vector<16xf32>
    %71 = vector.shape_cast %70 : vector<16xf32> to vector<16x1xf32>
    %72 = tpu.reciprocal %71 : vector<16x1xf32> -> vector<16x1xf32>
    %73 = vector.broadcast %72 : vector<16x1xf32> to vector<16x16xf32>
    %74 = arith.mulf %69, %73 : vector<16x16xf32>
    %75 = vector.extract_strided_slice %44 {offsets = [0, 8], sizes = [16, 8], strides = [1, 1]} : vector<16x32xf32> to vector<16x8xf32>
    %cst_26 = arith.constant dense<0.000000e+00> : vector<16x8xf32>
    %76 = tpu.matmul %74, %75, %cst_26 {dimension_numbers = #tpu.dot_dimension_numbers<[1], [0], [0], [1], [0, 0, 1, 1], [], []>} : vector<16x16xf32>, vector<16x8xf32>, vector<16x8xf32> -> vector<16x8xf32>
    %77 = vector.extract_strided_slice %42 {offsets = [0, 16], sizes = [16, 8], strides = [1, 1]} : vector<16x32xf32> to vector<16x8xf32>
    %78 = vector.extract_strided_slice %43 {offsets = [0, 16], sizes = [16, 8], strides = [1, 1]} : vector<16x32xf32> to vector<16x8xf32>
    %cst_27 = arith.constant dense<0.000000e+00> : vector<16x16xf32>
    %79 = tpu.matmul %77, %78, %cst_27 {dimension_numbers = #tpu.dot_dimension_numbers<[1], [1], [0], [0], [0, 0, 1, 0], [], []>} : vector<16x8xf32>, vector<16x8xf32>, vector<16x16xf32> -> vector<16x16xf32>
    %80 = arith.addf %79, %1 : vector<16x16xf32>
    %cst_28 = arith.constant dense<0xFF800000> : vector<16xf32>
    %81 = vector.multi_reduction <maximumf>, %80, %cst_28 [1] : vector<16x16xf32> to vector<16xf32>
    %82 = vector.shape_cast %81 : vector<16xf32> to vector<16x1xf32>
    %83 = vector.broadcast %82 : vector<16x1xf32> to vector<16x16xf32>
    %84 = arith.subf %80, %83 : vector<16x16xf32>
    %85 = math.exp %84 : vector<16x16xf32>
    %cst_29 = arith.constant dense<0.000000e+00> : vector<16xf32>
    %86 = vector.multi_reduction <add>, %85, %cst_29 [1] : vector<16x16xf32> to vector<16xf32>
    %87 = vector.shape_cast %86 : vector<16xf32> to vector<16x1xf32>
    %88 = tpu.reciprocal %87 : vector<16x1xf32> -> vector<16x1xf32>
    %89 = vector.broadcast %88 : vector<16x1xf32> to vector<16x16xf32>
    %90 = arith.mulf %85, %89 : vector<16x16xf32>
    %91 = vector.extract_strided_slice %44 {offsets = [0, 16], sizes = [16, 8], strides = [1, 1]} : vector<16x32xf32> to vector<16x8xf32>
    %cst_30 = arith.constant dense<0.000000e+00> : vector<16x8xf32>
    %92 = tpu.matmul %90, %91, %cst_30 {dimension_numbers = #tpu.dot_dimension_numbers<[1], [0], [0], [1], [0, 0, 1, 1], [], []>} : vector<16x16xf32>, vector<16x8xf32>, vector<16x8xf32> -> vector<16x8xf32>
    %93 = vector.extract_strided_slice %42 {offsets = [0, 24], sizes = [16, 8], strides = [1, 1]} : vector<16x32xf32> to vector<16x8xf32>
    %94 = vector.extract_strided_slice %43 {offsets = [0, 24], sizes = [16, 8], strides = [1, 1]} : vector<16x32xf32> to vector<16x8xf32>
    %cst_31 = arith.constant dense<0.000000e+00> : vector<16x16xf32>
    %95 = tpu.matmul %93, %94, %cst_31 {dimension_numbers = #tpu.dot_dimension_numbers<[1], [1], [0], [0], [0, 0, 1, 0], [], []>} : vector<16x8xf32>, vector<16x8xf32>, vector<16x16xf32> -> vector<16x16xf32>
    %96 = arith.addf %95, %1 : vector<16x16xf32>
    %cst_32 = arith.constant dense<0xFF800000> : vector<16xf32>
    %97 = vector.multi_reduction <maximumf>, %96, %cst_32 [1] : vector<16x16xf32> to vector<16xf32>
    %98 = vector.shape_cast %97 : vector<16xf32> to vector<16x1xf32>
    %99 = vector.broadcast %98 : vector<16x1xf32> to vector<16x16xf32>
    %100 = arith.subf %96, %99 : vector<16x16xf32>
    %101 = math.exp %100 : vector<16x16xf32>
    %cst_33 = arith.constant dense<0.000000e+00> : vector<16xf32>
    %102 = vector.multi_reduction <add>, %101, %cst_33 [1] : vector<16x16xf32> to vector<16xf32>
    %103 = vector.shape_cast %102 : vector<16xf32> to vector<16x1xf32>
    %104 = tpu.reciprocal %103 : vector<16x1xf32> -> vector<16x1xf32>
    %105 = vector.broadcast %104 : vector<16x1xf32> to vector<16x16xf32>
    %106 = arith.mulf %101, %105 : vector<16x16xf32>
    %107 = vector.extract_strided_slice %44 {offsets = [0, 24], sizes = [16, 8], strides = [1, 1]} : vector<16x32xf32> to vector<16x8xf32>
    %cst_34 = arith.constant dense<0.000000e+00> : vector<16x8xf32>
    %108 = tpu.matmul %106, %107, %cst_34 {dimension_numbers = #tpu.dot_dimension_numbers<[1], [0], [0], [1], [0, 0, 1, 1], [], []>} : vector<16x16xf32>, vector<16x8xf32>, vector<16x8xf32> -> vector<16x8xf32>
    %109 = tpu.concatenate %60, %76, %92, %108 in 1 : vector<16x8xf32>, vector<16x8xf32>, vector<16x8xf32>, vector<16x8xf32> -> vector<16x32xf32>
    %c0_35 = arith.constant 0 : index
    %c0_36 = arith.constant 0 : index
    %c0_37 = arith.constant 0 : index
    %110 = vector.load %arg4[%c0_35, %c0_36, %c0_37] : memref<2x32x32xf32, #tpu.memory_space<vmem>>, vector<1x32x32xf32>
    %111 = vector.shape_cast %110 : vector<1x32x32xf32> to vector<32x32xf32>
    %cst_38 = arith.constant dense<0.000000e+00> : vector<16x32xf32>
    %112 = tpu.matmul %109, %111, %cst_38 {dimension_numbers = #tpu.dot_dimension_numbers<[1], [0], [0], [1], [0, 0, 1, 1], [], []>} : vector<16x32xf32>, vector<32x32xf32>, vector<16x32xf32> -> vector<16x32xf32>
    %113 = vector.broadcast %10 : vector<1x32xf32> to vector<16x32xf32>
    %114 = arith.addf %112, %113 : vector<16x32xf32>
    %115 = arith.addf %0, %114 : vector<16x32xf32>
    %cst_39 = arith.constant dense<0.000000e+00> : vector<16xf32>
    %116 = vector.multi_reduction <add>, %115, %cst_39 [1] : vector<16x32xf32> to vector<16xf32>
    %117 = vector.shape_cast %116 : vector<16xf32> to vector<16x1xf32>
    %cst_40 = arith.constant 3.200000e+01 : f32
    %118 = vector.broadcast %cst_40 : f32 to vector<16x1xf32>
    %119 = arith.divf %117, %118 : vector<16x1xf32>
    %120 = vector.broadcast %119 : vector<16x1xf32> to vector<16x32xf32>
    %121 = arith.subf %115, %120 : vector<16x32xf32>
    %122 = arith.mulf %121, %121 : vector<16x32xf32>
    %cst_41 = arith.constant dense<0.000000e+00> : vector<16xf32>
    %123 = vector.multi_reduction <add>, %122, %cst_41 [1] : vector<16x32xf32> to vector<16xf32>
    %124 = vector.shape_cast %123 : vector<16xf32> to vector<16x1xf32>
    %cst_42 = arith.constant 0.0322580636 : f32
    %125 = vector.broadcast %cst_42 : f32 to vector<16x1xf32>
    %126 = arith.mulf %124, %125 : vector<16x1xf32>
    %127 = math.sqrt %126 : vector<16x1xf32>
    %cst_43 = arith.constant 9.99999997E-7 : f32
    %128 = vector.broadcast %cst_43 : f32 to vector<16x1xf32>
    %129 = arith.addf %127, %128 : vector<16x1xf32>
    %130 = tpu.reciprocal %129 : vector<16x1xf32> -> vector<16x1xf32>
    %131 = vector.broadcast %130 : vector<16x1xf32> to vector<16x32xf32>
    %132 = arith.mulf %121, %131 : vector<16x32xf32>
    %133 = vector.broadcast %8 : vector<1x32xf32> to vector<16x32xf32>
    %134 = arith.mulf %133, %132 : vector<16x32xf32>
    %135 = vector.broadcast %9 : vector<1x32xf32> to vector<16x32xf32>
    %136 = arith.addf %134, %135 : vector<16x32xf32>
    %c0_44 = arith.constant 0 : index
    %c0_45 = arith.constant 0 : index
    %c0_46 = arith.constant 0 : index
    %137 = vector.load %arg5[%c0_44, %c0_45, %c0_46] : memref<2x32x64xf32, #tpu.memory_space<vmem>>, vector<1x32x64xf32>
    %138 = vector.shape_cast %137 : vector<1x32x64xf32> to vector<32x64xf32>
    %cst_47 = arith.constant dense<0.000000e+00> : vector<16x64xf32>
    %139 = tpu.matmul %136, %138, %cst_47 {dimension_numbers = #tpu.dot_dimension_numbers<[1], [0], [0], [1], [0, 0, 1, 1], [], []>} : vector<16x32xf32>, vector<32x64xf32>, vector<16x64xf32> -> vector<16x64xf32>
    %c0_48 = arith.constant 0 : index
    %c0_49 = arith.constant 0 : index
    %c0_50 = arith.constant 0 : index
    %140 = vector.load %arg6[%c0_48, %c0_49, %c0_50] : memref<2x1x64xf32, #tpu.memory_space<vmem>>, vector<1x1x64xf32>
    %141 = vector.shape_cast %140 : vector<1x1x64xf32> to vector<1x64xf32>
    %142 = vector.broadcast %141 : vector<1x64xf32> to vector<16x64xf32>
    %143 = arith.addf %139, %142 : vector<16x64xf32>
    %cst_51 = arith.constant 0.000000e+00 : f32
    %144 = vector.broadcast %cst_51 : f32 to vector<16x64xf32>
    %145 = arith.maximumf %143, %144 : vector<16x64xf32>
    %c0_52 = arith.constant 0 : index
    %c0_53 = arith.constant 0 : index
    %c0_54 = arith.constant 0 : index
    %146 = vector.load %arg7[%c0_52, %c0_53, %c0_54] : memref<2x64x32xf32, #tpu.memory_space<vmem>>, vector<1x64x32xf32>
    %147 = vector.shape_cast %146 : vector<1x64x32xf32> to vector<64x32xf32>
    %cst_55 = arith.constant dense<0.000000e+00> : vector<16x32xf32>
    %148 = tpu.matmul %145, %147, %cst_55 {dimension_numbers = #tpu.dot_dimension_numbers<[1], [0], [0], [1], [0, 0, 1, 1], [], []>} : vector<16x64xf32>, vector<64x32xf32>, vector<16x32xf32> -> vector<16x32xf32>
    %149 = vector.broadcast %11 : vector<1x32xf32> to vector<16x32xf32>
    %150 = arith.addf %148, %149 : vector<16x32xf32>
    %151 = arith.addf %115, %150 : vector<16x32xf32>
    %c1 = arith.constant 1 : index
    %c0_56 = arith.constant 0 : index
    %c0_57 = arith.constant 0 : index
    %152 = vector.load %arg8[%c1, %c0_56, %c0_57] : memref<2x6x32xf32, #tpu.memory_space<vmem>>, vector<1x6x32xf32>
    %153 = vector.shape_cast %152 : vector<1x6x32xf32> to vector<6x32xf32>
    %154 = vector.extract_strided_slice %153 {offsets = [0, 0], sizes = [1, 32], strides = [1, 1]} : vector<6x32xf32> to vector<1x32xf32>
    %155 = vector.extract_strided_slice %153 {offsets = [1, 0], sizes = [1, 32], strides = [1, 1]} : vector<6x32xf32> to vector<1x32xf32>
    %156 = vector.extract_strided_slice %153 {offsets = [2, 0], sizes = [1, 32], strides = [1, 1]} : vector<6x32xf32> to vector<1x32xf32>
    %157 = vector.extract_strided_slice %153 {offsets = [3, 0], sizes = [1, 32], strides = [1, 1]} : vector<6x32xf32> to vector<1x32xf32>
    %158 = vector.extract_strided_slice %153 {offsets = [4, 0], sizes = [1, 32], strides = [1, 1]} : vector<6x32xf32> to vector<1x32xf32>
    %159 = vector.extract_strided_slice %153 {offsets = [5, 0], sizes = [1, 32], strides = [1, 1]} : vector<6x32xf32> to vector<1x32xf32>
    %cst_58 = arith.constant dense<0.000000e+00> : vector<16xf32>
    %160 = vector.multi_reduction <add>, %151, %cst_58 [1] : vector<16x32xf32> to vector<16xf32>
    %161 = vector.shape_cast %160 : vector<16xf32> to vector<16x1xf32>
    %cst_59 = arith.constant 3.200000e+01 : f32
    %162 = vector.broadcast %cst_59 : f32 to vector<16x1xf32>
    %163 = arith.divf %161, %162 : vector<16x1xf32>
    %164 = vector.broadcast %163 : vector<16x1xf32> to vector<16x32xf32>
    %165 = arith.subf %151, %164 : vector<16x32xf32>
    %166 = arith.mulf %165, %165 : vector<16x32xf32>
    %cst_60 = arith.constant dense<0.000000e+00> : vector<16xf32>
    %167 = vector.multi_reduction <add>, %166, %cst_60 [1] : vector<16x32xf32> to vector<16xf32>
    %168 = vector.shape_cast %167 : vector<16xf32> to vector<16x1xf32>
    %cst_61 = arith.constant 0.0322580636 : f32
    %169 = vector.broadcast %cst_61 : f32 to vector<16x1xf32>
    %170 = arith.mulf %168, %169 : vector<16x1xf32>
    %171 = math.sqrt %170 : vector<16x1xf32>
    %cst_62 = arith.constant 9.99999997E-7 : f32
    %172 = vector.broadcast %cst_62 : f32 to vector<16x1xf32>
    %173 = arith.addf %171, %172 : vector<16x1xf32>
    %174 = tpu.reciprocal %173 : vector<16x1xf32> -> vector<16x1xf32>
    %175 = vector.broadcast %174 : vector<16x1xf32> to vector<16x32xf32>
    %176 = arith.mulf %165, %175 : vector<16x32xf32>
    %177 = vector.broadcast %154 : vector<1x32xf32> to vector<16x32xf32>
    %178 = arith.mulf %177, %176 : vector<16x32xf32>
    %179 = vector.broadcast %155 : vector<1x32xf32> to vector<16x32xf32>
    %180 = arith.addf %178, %179 : vector<16x32xf32>
    %c1_63 = arith.constant 1 : index
    %c0_64 = arith.constant 0 : index
    %c0_65 = arith.constant 0 : index
    %181 = vector.load %arg2[%c1_63, %c0_64, %c0_65] : memref<2x32x96xf32, #tpu.memory_space<vmem>>, vector<1x32x96xf32>
    %182 = vector.shape_cast %181 : vector<1x32x96xf32> to vector<32x96xf32>
    %cst_66 = arith.constant dense<0.000000e+00> : vector<16x96xf32>
    %183 = tpu.matmul %180, %182, %cst_66 {dimension_numbers = #tpu.dot_dimension_numbers<[1], [0], [0], [1], [0, 0, 1, 1], [], []>} : vector<16x32xf32>, vector<32x96xf32>, vector<16x96xf32> -> vector<16x96xf32>
    %c1_67 = arith.constant 1 : index
    %c0_68 = arith.constant 0 : index
    %c0_69 = arith.constant 0 : index
    %184 = vector.load %arg3[%c1_67, %c0_68, %c0_69] : memref<2x1x96xf32, #tpu.memory_space<vmem>>, vector<1x1x96xf32>
    %185 = vector.shape_cast %184 : vector<1x1x96xf32> to vector<1x96xf32>
    %186 = vector.broadcast %185 : vector<1x96xf32> to vector<16x96xf32>
    %187 = arith.addf %183, %186 : vector<16x96xf32>
    %188 = vector.extract_strided_slice %187 {offsets = [0, 0], sizes = [16, 32], strides = [1, 1]} : vector<16x96xf32> to vector<16x32xf32>
    %189 = vector.broadcast %3 : f32 to vector<16x32xf32>
    %190 = arith.mulf %188, %189 : vector<16x32xf32>
    %191 = vector.extract_strided_slice %187 {offsets = [0, 32], sizes = [16, 32], strides = [1, 1]} : vector<16x96xf32> to vector<16x32xf32>
    %192 = vector.extract_strided_slice %187 {offsets = [0, 64], sizes = [16, 32], strides = [1, 1]} : vector<16x96xf32> to vector<16x32xf32>
    %193 = vector.extract_strided_slice %190 {offsets = [0, 0], sizes = [16, 8], strides = [1, 1]} : vector<16x32xf32> to vector<16x8xf32>
    %194 = vector.extract_strided_slice %191 {offsets = [0, 0], sizes = [16, 8], strides = [1, 1]} : vector<16x32xf32> to vector<16x8xf32>
    %cst_70 = arith.constant dense<0.000000e+00> : vector<16x16xf32>
    %195 = tpu.matmul %193, %194, %cst_70 {dimension_numbers = #tpu.dot_dimension_numbers<[1], [1], [0], [0], [0, 0, 1, 0], [], []>} : vector<16x8xf32>, vector<16x8xf32>, vector<16x16xf32> -> vector<16x16xf32>
    %196 = arith.addf %195, %1 : vector<16x16xf32>
    %cst_71 = arith.constant dense<0xFF800000> : vector<16xf32>
    %197 = vector.multi_reduction <maximumf>, %196, %cst_71 [1] : vector<16x16xf32> to vector<16xf32>
    %198 = vector.shape_cast %197 : vector<16xf32> to vector<16x1xf32>
    %199 = vector.broadcast %198 : vector<16x1xf32> to vector<16x16xf32>
    %200 = arith.subf %196, %199 : vector<16x16xf32>
    %201 = math.exp %200 : vector<16x16xf32>
    %cst_72 = arith.constant dense<0.000000e+00> : vector<16xf32>
    %202 = vector.multi_reduction <add>, %201, %cst_72 [1] : vector<16x16xf32> to vector<16xf32>
    %203 = vector.shape_cast %202 : vector<16xf32> to vector<16x1xf32>
    %204 = tpu.reciprocal %203 : vector<16x1xf32> -> vector<16x1xf32>
    %205 = vector.broadcast %204 : vector<16x1xf32> to vector<16x16xf32>
    %206 = arith.mulf %201, %205 : vector<16x16xf32>
    %207 = vector.extract_strided_slice %192 {offsets = [0, 0], sizes = [16, 8], strides = [1, 1]} : vector<16x32xf32> to vector<16x8xf32>
    %cst_73 = arith.constant dense<0.000000e+00> : vector<16x8xf32>
    %208 = tpu.matmul %206, %207, %cst_73 {dimension_numbers = #tpu.dot_dimension_numbers<[1], [0], [0], [1], [0, 0, 1, 1], [], []>} : vector<16x16xf32>, vector<16x8xf32>, vector<16x8xf32> -> vector<16x8xf32>
    %209 = vector.extract_strided_slice %190 {offsets = [0, 8], sizes = [16, 8], strides = [1, 1]} : vector<16x32xf32> to vector<16x8xf32>
    %210 = vector.extract_strided_slice %191 {offsets = [0, 8], sizes = [16, 8], strides = [1, 1]} : vector<16x32xf32> to vector<16x8xf32>
    %cst_74 = arith.constant dense<0.000000e+00> : vector<16x16xf32>
    %211 = tpu.matmul %209, %210, %cst_74 {dimension_numbers = #tpu.dot_dimension_numbers<[1], [1], [0], [0], [0, 0, 1, 0], [], []>} : vector<16x8xf32>, vector<16x8xf32>, vector<16x16xf32> -> vector<16x16xf32>
    %212 = arith.addf %211, %1 : vector<16x16xf32>
    %cst_75 = arith.constant dense<0xFF800000> : vector<16xf32>
    %213 = vector.multi_reduction <maximumf>, %212, %cst_75 [1] : vector<16x16xf32> to vector<16xf32>
    %214 = vector.shape_cast %213 : vector<16xf32> to vector<16x1xf32>
    %215 = vector.broadcast %214 : vector<16x1xf32> to vector<16x16xf32>
    %216 = arith.subf %212, %215 : vector<16x16xf32>
    %217 = math.exp %216 : vector<16x16xf32>
    %cst_76 = arith.constant dense<0.000000e+00> : vector<16xf32>
    %218 = vector.multi_reduction <add>, %217, %cst_76 [1] : vector<16x16xf32> to vector<16xf32>
    %219 = vector.shape_cast %218 : vector<16xf32> to vector<16x1xf32>
    %220 = tpu.reciprocal %219 : vector<16x1xf32> -> vector<16x1xf32>
    %221 = vector.broadcast %220 : vector<16x1xf32> to vector<16x16xf32>
    %222 = arith.mulf %217, %221 : vector<16x16xf32>
    %223 = vector.extract_strided_slice %192 {offsets = [0, 8], sizes = [16, 8], strides = [1, 1]} : vector<16x32xf32> to vector<16x8xf32>
    %cst_77 = arith.constant dense<0.000000e+00> : vector<16x8xf32>
    %224 = tpu.matmul %222, %223, %cst_77 {dimension_numbers = #tpu.dot_dimension_numbers<[1], [0], [0], [1], [0, 0, 1, 1], [], []>} : vector<16x16xf32>, vector<16x8xf32>, vector<16x8xf32> -> vector<16x8xf32>
    %225 = vector.extract_strided_slice %190 {offsets = [0, 16], sizes = [16, 8], strides = [1, 1]} : vector<16x32xf32> to vector<16x8xf32>
    %226 = vector.extract_strided_slice %191 {offsets = [0, 16], sizes = [16, 8], strides = [1, 1]} : vector<16x32xf32> to vector<16x8xf32>
    %cst_78 = arith.constant dense<0.000000e+00> : vector<16x16xf32>
    %227 = tpu.matmul %225, %226, %cst_78 {dimension_numbers = #tpu.dot_dimension_numbers<[1], [1], [0], [0], [0, 0, 1, 0], [], []>} : vector<16x8xf32>, vector<16x8xf32>, vector<16x16xf32> -> vector<16x16xf32>
    %228 = arith.addf %227, %1 : vector<16x16xf32>
    %cst_79 = arith.constant dense<0xFF800000> : vector<16xf32>
    %229 = vector.multi_reduction <maximumf>, %228, %cst_79 [1] : vector<16x16xf32> to vector<16xf32>
    %230 = vector.shape_cast %229 : vector<16xf32> to vector<16x1xf32>
    %231 = vector.broadcast %230 : vector<16x1xf32> to vector<16x16xf32>
    %232 = arith.subf %228, %231 : vector<16x16xf32>
    %233 = math.exp %232 : vector<16x16xf32>
    %cst_80 = arith.constant dense<0.000000e+00> : vector<16xf32>
    %234 = vector.multi_reduction <add>, %233, %cst_80 [1] : vector<16x16xf32> to vector<16xf32>
    %235 = vector.shape_cast %234 : vector<16xf32> to vector<16x1xf32>
    %236 = tpu.reciprocal %235 : vector<16x1xf32> -> vector<16x1xf32>
    %237 = vector.broadcast %236 : vector<16x1xf32> to vector<16x16xf32>
    %238 = arith.mulf %233, %237 : vector<16x16xf32>
    %239 = vector.extract_strided_slice %192 {offsets = [0, 16], sizes = [16, 8], strides = [1, 1]} : vector<16x32xf32> to vector<16x8xf32>
    %cst_81 = arith.constant dense<0.000000e+00> : vector<16x8xf32>
    %240 = tpu.matmul %238, %239, %cst_81 {dimension_numbers = #tpu.dot_dimension_numbers<[1], [0], [0], [1], [0, 0, 1, 1], [], []>} : vector<16x16xf32>, vector<16x8xf32>, vector<16x8xf32> -> vector<16x8xf32>
    %241 = vector.extract_strided_slice %190 {offsets = [0, 24], sizes = [16, 8], strides = [1, 1]} : vector<16x32xf32> to vector<16x8xf32>
    %242 = vector.extract_strided_slice %191 {offsets = [0, 24], sizes = [16, 8], strides = [1, 1]} : vector<16x32xf32> to vector<16x8xf32>
    %cst_82 = arith.constant dense<0.000000e+00> : vector<16x16xf32>
    %243 = tpu.matmul %241, %242, %cst_82 {dimension_numbers = #tpu.dot_dimension_numbers<[1], [1], [0], [0], [0, 0, 1, 0], [], []>} : vector<16x8xf32>, vector<16x8xf32>, vector<16x16xf32> -> vector<16x16xf32>
    %244 = arith.addf %243, %1 : vector<16x16xf32>
    %cst_83 = arith.constant dense<0xFF800000> : vector<16xf32>
    %245 = vector.multi_reduction <maximumf>, %244, %cst_83 [1] : vector<16x16xf32> to vector<16xf32>
    %246 = vector.shape_cast %245 : vector<16xf32> to vector<16x1xf32>
    %247 = vector.broadcast %246 : vector<16x1xf32> to vector<16x16xf32>
    %248 = arith.subf %244, %247 : vector<16x16xf32>
    %249 = math.exp %248 : vector<16x16xf32>
    %cst_84 = arith.constant dense<0.000000e+00> : vector<16xf32>
    %250 = vector.multi_reduction <add>, %249, %cst_84 [1] : vector<16x16xf32> to vector<16xf32>
    %251 = vector.shape_cast %250 : vector<16xf32> to vector<16x1xf32>
    %252 = tpu.reciprocal %251 : vector<16x1xf32> -> vector<16x1xf32>
    %253 = vector.broadcast %252 : vector<16x1xf32> to vector<16x16xf32>
    %254 = arith.mulf %249, %253 : vector<16x16xf32>
    %255 = vector.extract_strided_slice %192 {offsets = [0, 24], sizes = [16, 8], strides = [1, 1]} : vector<16x32xf32> to vector<16x8xf32>
    %cst_85 = arith.constant dense<0.000000e+00> : vector<16x8xf32>
    %256 = tpu.matmul %254, %255, %cst_85 {dimension_numbers = #tpu.dot_dimension_numbers<[1], [0], [0], [1], [0, 0, 1, 1], [], []>} : vector<16x16xf32>, vector<16x8xf32>, vector<16x8xf32> -> vector<16x8xf32>
    %257 = tpu.concatenate %208, %224, %240, %256 in 1 : vector<16x8xf32>, vector<16x8xf32>, vector<16x8xf32>, vector<16x8xf32> -> vector<16x32xf32>
    %c1_86 = arith.constant 1 : index
    %c0_87 = arith.constant 0 : index
    %c0_88 = arith.constant 0 : index
    %258 = vector.load %arg4[%c1_86, %c0_87, %c0_88] : memref<2x32x32xf32, #tpu.memory_space<vmem>>, vector<1x32x32xf32>
    %259 = vector.shape_cast %258 : vector<1x32x32xf32> to vector<32x32xf32>
    %cst_89 = arith.constant dense<0.000000e+00> : vector<16x32xf32>
    %260 = tpu.matmul %257, %259, %cst_89 {dimension_numbers = #tpu.dot_dimension_numbers<[1], [0], [0], [1], [0, 0, 1, 1], [], []>} : vector<16x32xf32>, vector<32x32xf32>, vector<16x32xf32> -> vector<16x32xf32>
    %261 = vector.broadcast %158 : vector<1x32xf32> to vector<16x32xf32>
    %262 = arith.addf %260, %261 : vector<16x32xf32>
    %263 = arith.addf %151, %262 : vector<16x32xf32>
    %cst_90 = arith.constant dense<0.000000e+00> : vector<16xf32>
    %264 = vector.multi_reduction <add>, %263, %cst_90 [1] : vector<16x32xf32> to vector<16xf32>
    %265 = vector.shape_cast %264 : vector<16xf32> to vector<16x1xf32>
    %cst_91 = arith.constant 3.200000e+01 : f32
    %266 = vector.broadcast %cst_91 : f32 to vector<16x1xf32>
    %267 = arith.divf %265, %266 : vector<16x1xf32>
    %268 = vector.broadcast %267 : vector<16x1xf32> to vector<16x32xf32>
    %269 = arith.subf %263, %268 : vector<16x32xf32>
    %270 = arith.mulf %269, %269 : vector<16x32xf32>
    %cst_92 = arith.constant dense<0.000000e+00> : vector<16xf32>
    %271 = vector.multi_reduction <add>, %270, %cst_92 [1] : vector<16x32xf32> to vector<16xf32>
    %272 = vector.shape_cast %271 : vector<16xf32> to vector<16x1xf32>
    %cst_93 = arith.constant 0.0322580636 : f32
    %273 = vector.broadcast %cst_93 : f32 to vector<16x1xf32>
    %274 = arith.mulf %272, %273 : vector<16x1xf32>
    %275 = math.sqrt %274 : vector<16x1xf32>
    %cst_94 = arith.constant 9.99999997E-7 : f32
    %276 = vector.broadcast %cst_94 : f32 to vector<16x1xf32>
    %277 = arith.addf %275, %276 : vector<16x1xf32>
    %278 = tpu.reciprocal %277 : vector<16x1xf32> -> vector<16x1xf32>
    %279 = vector.broadcast %278 : vector<16x1xf32> to vector<16x32xf32>
    %280 = arith.mulf %269, %279 : vector<16x32xf32>
    %281 = vector.broadcast %156 : vector<1x32xf32> to vector<16x32xf32>
    %282 = arith.mulf %281, %280 : vector<16x32xf32>
    %283 = vector.broadcast %157 : vector<1x32xf32> to vector<16x32xf32>
    %284 = arith.addf %282, %283 : vector<16x32xf32>
    %c1_95 = arith.constant 1 : index
    %c0_96 = arith.constant 0 : index
    %c0_97 = arith.constant 0 : index
    %285 = vector.load %arg5[%c1_95, %c0_96, %c0_97] : memref<2x32x64xf32, #tpu.memory_space<vmem>>, vector<1x32x64xf32>
    %286 = vector.shape_cast %285 : vector<1x32x64xf32> to vector<32x64xf32>
    %cst_98 = arith.constant dense<0.000000e+00> : vector<16x64xf32>
    %287 = tpu.matmul %284, %286, %cst_98 {dimension_numbers = #tpu.dot_dimension_numbers<[1], [0], [0], [1], [0, 0, 1, 1], [], []>} : vector<16x32xf32>, vector<32x64xf32>, vector<16x64xf32> -> vector<16x64xf32>
    %c1_99 = arith.constant 1 : index
    %c0_100 = arith.constant 0 : index
    %c0_101 = arith.constant 0 : index
    %288 = vector.load %arg6[%c1_99, %c0_100, %c0_101] : memref<2x1x64xf32, #tpu.memory_space<vmem>>, vector<1x1x64xf32>
    %289 = vector.shape_cast %288 : vector<1x1x64xf32> to vector<1x64xf32>
    %290 = vector.broadcast %289 : vector<1x64xf32> to vector<16x64xf32>
    %291 = arith.addf %287, %290 : vector<16x64xf32>
    %cst_102 = arith.constant 0.000000e+00 : f32
    %292 = vector.broadcast %cst_102 : f32 to vector<16x64xf32>
    %293 = arith.maximumf %291, %292 : vector<16x64xf32>
    %c1_103 = arith.constant 1 : index
    %c0_104 = arith.constant 0 : index
    %c0_105 = arith.constant 0 : index
    %294 = vector.load %arg7[%c1_103, %c0_104, %c0_105] : memref<2x64x32xf32, #tpu.memory_space<vmem>>, vector<1x64x32xf32>
    %295 = vector.shape_cast %294 : vector<1x64x32xf32> to vector<64x32xf32>
    %cst_106 = arith.constant dense<0.000000e+00> : vector<16x32xf32>
    %296 = tpu.matmul %293, %295, %cst_106 {dimension_numbers = #tpu.dot_dimension_numbers<[1], [0], [0], [1], [0, 0, 1, 1], [], []>} : vector<16x64xf32>, vector<64x32xf32>, vector<16x32xf32> -> vector<16x32xf32>
    %297 = vector.broadcast %159 : vector<1x32xf32> to vector<16x32xf32>
    %298 = arith.addf %296, %297 : vector<16x32xf32>
    %299 = arith.addf %263, %298 : vector<16x32xf32>
    %c0_107 = arith.constant 0 : index
    %c0_108 = arith.constant 0 : index
    %300 = vector.load %arg9[%c0_107, %c0_108] : memref<2x32xf32, #tpu.memory_space<vmem>>, vector<2x32xf32>
    %301 = vector.extract_strided_slice %300 {offsets = [0, 0], sizes = [1, 32], strides = [1, 1]} : vector<2x32xf32> to vector<1x32xf32>
    %302 = vector.extract_strided_slice %300 {offsets = [1, 0], sizes = [1, 32], strides = [1, 1]} : vector<2x32xf32> to vector<1x32xf32>
    %cst_109 = arith.constant dense<0.000000e+00> : vector<16xf32>
    %303 = vector.multi_reduction <add>, %299, %cst_109 [1] : vector<16x32xf32> to vector<16xf32>
    %304 = vector.shape_cast %303 : vector<16xf32> to vector<16x1xf32>
    %cst_110 = arith.constant 3.200000e+01 : f32
    %305 = vector.broadcast %cst_110 : f32 to vector<16x1xf32>
    %306 = arith.divf %304, %305 : vector<16x1xf32>
    %307 = vector.broadcast %306 : vector<16x1xf32> to vector<16x32xf32>
    %308 = arith.subf %299, %307 : vector<16x32xf32>
    %309 = arith.mulf %308, %308 : vector<16x32xf32>
    %cst_111 = arith.constant dense<0.000000e+00> : vector<16xf32>
    %310 = vector.multi_reduction <add>, %309, %cst_111 [1] : vector<16x32xf32> to vector<16xf32>
    %311 = vector.shape_cast %310 : vector<16xf32> to vector<16x1xf32>
    %cst_112 = arith.constant 0.0322580636 : f32
    %312 = vector.broadcast %cst_112 : f32 to vector<16x1xf32>
    %313 = arith.mulf %311, %312 : vector<16x1xf32>
    %314 = math.sqrt %313 : vector<16x1xf32>
    %cst_113 = arith.constant 9.99999997E-7 : f32
    %315 = vector.broadcast %cst_113 : f32 to vector<16x1xf32>
    %316 = arith.addf %314, %315 : vector<16x1xf32>
    %317 = tpu.reciprocal %316 : vector<16x1xf32> -> vector<16x1xf32>
    %318 = vector.broadcast %317 : vector<16x1xf32> to vector<16x32xf32>
    %319 = arith.mulf %308, %318 : vector<16x32xf32>
    %320 = vector.broadcast %301 : vector<1x32xf32> to vector<16x32xf32>
    %321 = arith.mulf %320, %319 : vector<16x32xf32>
    %322 = vector.broadcast %302 : vector<1x32xf32> to vector<16x32xf32>
    %323 = arith.addf %321, %322 : vector<16x32xf32>
    %c0_114 = arith.constant 0 : index
    %c0_115 = arith.constant 0 : index
    %324 = vector.load %arg10[%c0_114, %c0_115] : memref<16x32xf32, #tpu.memory_space<vmem>>, vector<16x32xf32>
    tpu.vector_store %arg10[%c0_114, %c0_115], %323 {strides = array<i32>} : memref<16x32xf32, #tpu.memory_space<vmem>>, vector<16x32xf32>,
    return
  }
}

</mosaic_0001>

<bundles_post_ra>
// kernel: encoder_forward.1
= control target key start
LH: loop header
LB: loop body
LE: loop exit
PB: predicated region body
PF: predicated region fallthrough
CT: control target
= control target key end

     0   :  { %vm41_vm0 = vcmask 261120   ;;  %s4174_s0 = inlined_call_operand.vmem [shape: f32[16,32], index: 0, kind: input, shape index: {}]   ;;  %s4175_s1 = inlined_call_operand.vmem [shape: f32[16,16], index: 1, kind: input, shape index: {}]   ;;  %s4176_s2 = inlined_call_operand.vmem [shape: f32[2,32,96], index: 2, kind: input, shape index: {}]   ;;  %s4177_s3 = inlined_call_operand.vmem [shape: f32[2,1,96], index: 3, kind: input, shape index: {}]   ;;  %s4178_s4 = inlined_call_operand.vmem [shape: f32[2,32,32], index: 4, kind: input, shape index: {}]   ;;  %s4179_s5 = inlined_call_operand.vmem [shape: f32[2,32,64], index: 5, kind: input, shape index: {}]   ;;  %s4180_s6 = inlined_call_operand.vmem [shape: f32[2,1,64], index: 6, kind: input, shape index: {}]   ;;  %s4181_s7 = inlined_call_operand.vmem [shape: f32[2,64,32], index: 7, kind: input, shape index: {}]   ;;  %s4182_s8 = inlined_call_operand.vmem [shape: f32[2,6,32], index: 8, kind: input, shape index: {}]   ;;  %s4183_s9 = inlined_call_operand.vmem [shape: f32[2,32], index: 9, kind: input, shape index: {}]   ;;  %s4184_s10 = inlined_call_operand.hbm [shape: f32[16,32], index: 10, kind: output, shape index: {}]  }
   0x1   :  { %v3629_v0 = vld [vmem:[%s4174_s0] sm:$0xff]  ;;  %v3634_v1 = vld [vmem:[%s4174_s0 + $0x8] sm:$0xff] }
   0x2   :  { %15 = vsyncpa [#allocation3], 0  ;;  %v42_v2 = vsel %vm41_vm0, %v3629_v0, 0.0  ;;  %v45_v3 = vsel %vm41_vm0, %v3634_v1, 0.0  ;;  %v95_v14 = vld [vmem:[%s4176_s2] sm:$0xff]  ;;  %v96_v15 = vld [vmem:[%s4176_s2 + $0x8] sm:$0xff]  ;;  %v83_v30 = vlaneseq }
   0x3   :  { %43 = vadd.xlane.f32.xlu0 %v42_v2  ;;  %v97_v16 = vld [vmem:[%s4176_s2 + $0x10] sm:$0xff]  ;;  %v3169_v17 = vpack.c.bf16 %v96_v15, %v95_v14  ;;  %v98_v18 = vld [vmem:[%s4176_s2 + $0x18] sm:$0xff]  ;;  %v3664_v39 = vld [vmem:[%s4182_s8] sm:$0x3f]  ;;  %vm195_vm5 = vcmask 64512   ;;  %s3555_s28 = smov 88  }
   0x4   :  { %v3173_v19 = vpack.c.bf16 %v98_v18, %v97_v16  ;;  %v3656_v36 = vshrl.u32 %v83_v30, 7  ;;  %v2742_v51 = vld [vmem:[%s4177_s3] ss:$0 sm:$0xff]  ;;  %s3556_s29 = smov 96   ;;  %s3557_s30 = smov 120   ;;  %vm3696_vm6 = vmpackc.low %vm195_vm5, %vm195_vm5  ;;  %vm281_vm7 = vcmask 130048  }
   0x5   :  { %3170 = vmatprep.subr.bf16.mxu1 %v3169_v17  ;;  %s3558_s15 = smov 56   ;;  %s3559_s16 = smov 64   ;;  %vm1019_vm8 = vcmask 195584   ;;  %vm1271_vm13 = vcmask 523264  }
   0x6   :  { %3172 = vmatpush3.bf16.msra.mxu1 %v3169_v17  ;;  %v3659_v38 = vsub.s32 0, %v3656_v36  ;;  %v3667_v40 = vsub.s32 1, %v3656_v36  ;;  %s3560_s0 = smov 80   ;;  %s3561_s17 = smov 112  }
   0x7   :  { %46 = vadd.xlane.f32.xlu0 %v45_v3  ;;  %3174 = vmatprep.subr.bf16.mxu1 %v3173_v19  ;;  %s3562_s18 = smov 48   ;;  %s3563_s19 = smov 104  }
   0x8   :  { %v86_v41 = vrot.slane %v3664_v39, %v3659_v38  ;;  %v92_v44 = vrot.slane %v3664_v39, %v3667_v40  ;;  %s3564_s20 = smov 72   ;;  %s3565_s21 = smov 40  }
   0x9   :  { %s4189_s22 = smov 8   ;;  %s4187_s23 = smov 16  }
   0xa   :  { %3176 = vmatpush3.bf16.msra.mxu1 %v3173_v19  ;;  %s4185_s24 = smov 24   ;;  %s4195_s14 = smov 24  }
  0x90   :  { %v44_v4 = vpop.xlane.xlu0 %43 }
  0x91   :  { %v49_v5 = vmul.f32 0.03125, %v44_v4 }
  0x93   :  { %v51_v6 = vsub.f32 %v3629_v0, %v49_v5 }
  0x94   :  { %v47_v7 = vpop.xlane.xlu0 %46 }
  0x95   :  { %v50_v8 = vmul.f32 0.03125, %v47_v7  ;;  %v53_v9 = vmul.f32 %v51_v6, %v51_v6 }
  0x97   :  { %v52_v10 = vsub.f32 %v3634_v1, %v50_v8  ;;  %v55_v11 = vsel %vm41_vm0, %v53_v9, 0.0  ;;  %v3715_v8 = vld [vmem:[%s4175_s1 + $0x8] sm:$0xff]  ;;  %v3720_v9 = vld [vmem:[%s4175_s1] sm:$0xff] }
  0x98   :  { %56 = vadd.xlane.f32.xlu1 %v55_v11 }
  0x99   :  { %v54_v12 = vmul.f32 %v52_v10, %v52_v10 }
  0x9b   :  { %v58_v13 = vsel %vm41_vm0, %v54_v12, 0.0 }
  0x9c   :  { %59 = vadd.xlane.f32.xlu1 %v58_v13 }
 0x125   :  { %v57_v20 = vpop.xlane.xlu1 %56 }
 0x126   :  { %v61_v21 = vmul.f32 0.032258064, %v57_v20 }
 0x128   :  { %3425 = vrsqrt.f32 %v61_v21  ;;  %vm65_vm1 = vcmp.eq.f32.partialorder %v61_v21, inf  ;;  %v68_v26 = vand.u32 2147483648, %v61_v21  ;;  %vm67_vm2 = vcmp.eq.f32.partialorder %v61_v21, 0.0 }
 0x129   :  { %v60_v22 = vpop.xlane.xlu1 %59 }
 0x12a   :  { %v62_v23 = vmul.f32 0.032258064, %v60_v22 }
 0x12c   :  { %3427 = vrsqrt.f32 %v62_v23  ;;  %vm72_vm3 = vcmp.eq.f32.partialorder %v62_v23, inf  ;;  %v75_v33 = vand.u32 2147483648, %v62_v23  ;;  %vm74_vm4 = vcmp.eq.f32.partialorder %v62_v23, 0.0 }
 0x132   :  { %v3426_v24 = vpop.eup %3425 }
 0x133   :  { %v64_v25 = vmul.f32 %v3426_v24, %v61_v21 }
 0x135   :  { %v66_v27 = vsel %vm65_vm1, %v61_v21, %v64_v25 }
 0x136   :  { %v3428_v28 = vpop.eup %3427  ;;  %v69_v29 = vsel %vm67_vm2, %v68_v26, %v66_v27 }
 0x137   :  { %v71_v31 = vmul.f32 %v3428_v28, %v62_v23  ;;  %v77_v32 = vadd.f32 1e-06, %v69_v29 }
 0x139   :  { %v73_v34 = vsel %vm72_vm3, %v62_v23, %v71_v31  ;;  %3429 = vrcp.f32 %v77_v32 }
 0x13a   :  { %v76_v35 = vsel %vm74_vm4, %v75_v33, %v73_v34 }
 0x13b   :  { %v78_v37 = vadd.f32 1e-06, %v76_v35 }
 0x13d   :  { %3431 = vrcp.f32 %v78_v37 }
 0x143   :  { %v3430_v42 = vpop.eup %3429 }
 0x144   :  { %v81_v43 = vmul.f32 %v3430_v42, %v51_v6 }
 0x146   :  { %v87_v45 = vmul.f32 %v86_v41, %v81_v43 }
 0x147   :  { %v3432_v46 = vpop.eup %3431 }
 0x148   :  { %v82_v47 = vmul.f32 %v3432_v46, %v52_v10  ;;  %v93_v48 = vadd.f32 %v92_v44, %v87_v45 }
 0x14a   :  { %v88_v49 = vmul.f32 %v86_v41, %v82_v47  ;;  %2961 = vmatprep.mubr.msk.f32.mxu1 %vm41_vm0, %v93_v48 }
 0x14c   :  { %v94_v50 = vadd.f32 %v92_v44, %v88_v49 }
 0x14e   :  { %2962 = vmatmul.mubr.msk.f32.vlgmr.msra.gmra.mrb[0].mxu1 %vm41_vm0, %v94_v50 }
 0x221   :  { %v2963_v52 = vpop.f32.mrb[0].mxu1 }
 0x222   :  { %v184_v53 = vadd.f32 %v2963_v52, %v2742_v51  ;;  %v178_v54 = vpop.f32.mrb[1].mxu1 }
 0x223   :  { %v179_v55 = vadd.f32 %v2742_v51, %v178_v54 }
 0x224   :  { %v3690_v58 = vmul.f32 0.35355338, %v184_v53 }
 0x225   :  { %v3678_v56 = vpack.i.bf16 %v184_v53, %v179_v55  ;;  %v3680_v57 = vmul.f32 0.35355338, %v179_v55 }
 0x227   :  { %3351 = vrot.lane.b32.xlu1 %v3678_v56, %s3555_s28  ;;  %3346 = vrot.lane.b32.xlu0 %v3678_v56, %s3556_s29 }
 0x228   :  { %2968 = vmatprep.mubr.msk.f32.mxu1 %vm195_vm5, %v3680_v57 }
 0x22b   :  { %391 = vrot.lane.b32.xlu1 %v3680_v57, %s3557_s30 }
 0x22f   :  { %393 = vrot.lane.b32.xlu1 %v3690_v58, %s3557_s30 }
 0x299   :  { %v3352_v59 = vpop.permute.xlu1 %3351  ;;  %v3347_v60 = vpop.permute.xlu0 %3346 }
 0x29a   :  { %v3354_v61 = vunpack.i.h.bf16 %v3352_v59  ;;  %v3353_v62 = vunpack.i.l.bf16 %v3352_v59  ;;  %v3349_v63 = vunpack.i.h.bf16 %v3347_v60  ;;  %v3348_v2 = vunpack.i.l.bf16 %v3347_v60 }
 0x29c   :  { %v3177_v4 = vpack.c.bf16 %v3349_v63, %v3348_v2  ;;  %v3187_v5 = vpack.c.bf16 %v3354_v61, %v3353_v62 }
 0x29d   :  { %v392_v6 = vpop.permute.xlu1 %391 }
 0x29e   :  { %3179 = vmatprep.subr.msk.bf16.mxu1 %vm3696_vm6, %v3177_v4 }
 0x29f   :  { %3182 = vmatpush3.bf16.xpose.msk.msra.mxu1 %vm3696_vm6, %v3177_v4 }
 0x2a0   :  { %3189 = vmatprep.subr.msk.bf16.mxu1 %vm3696_vm6, %v3187_v5 }
 0x2a1   :  { %v394_v7 = vpop.permute.xlu1 %393 }
 0x2a6   :  { %2969 = vmatmul.mubr.msk.f32.vlgmr.msra.gmra.mrb[2].mxu1 %vm195_vm5, %v3690_v58 }
 0x2a7   :  { %3192 = vmatpush3.bf16.xpose.msk.msra.mxu1 %vm3696_vm6, %v3187_v5  ;;  %2982 = vmatprep.mubr.msk.f32.mxu1 %vm195_vm5, %v392_v6 }
 0x2ae   :  { %2983 = vmatmul.mubr.msk.f32.vlgmr.msra.gmra.mrb[4].mxu1 %vm195_vm5, %v394_v7 }
 0x379   :  { %v2970_v10 = vpop.f32.mrb[2].mxu1 }
 0x37a   :  { %v278_v11 = vadd.f32 %v2970_v10, %v3715_v8  ;;  %v272_v12 = vpop.f32.mrb[3].mxu1 }
 0x37b   :  { %v273_v13 = vadd.f32 %v272_v12, %v3720_v9 }
 0x37c   :  { %v285_v14 = vsel %vm281_vm7, %v278_v11, -inf }
 0x37d   :  { %286 = vmax.xlane.f32.xlu1 %v285_v14  ;;  %v282_v15 = vsel %vm281_vm7, %v273_v13, -inf }
 0x37e   :  { %283 = vmax.xlane.f32.xlu0 %v282_v15 }
 0x381   :  { %v2984_v16 = vpop.f32.mrb[4].mxu1 }
 0x382   :  { %v473_v17 = vpop.f32.mrb[5].mxu1  ;;  %v479_v19 = vadd.f32 %v2984_v16, %v3715_v8 }
 0x383   :  { %v474_v18 = vadd.f32 %v473_v17, %v3720_v9 }
 0x384   :  { %v485_v21 = vsel %vm281_vm7, %v479_v19, -inf }
 0x385   :  { %v482_v20 = vsel %vm281_vm7, %v474_v18, -inf }
 0x386   :  { %483 = vmax.xlane.f32.xlu0 %v482_v20 }
 0x38a   :  { %486 = vmax.xlane.f32.xlu0 %v485_v21 }
 0x40a   :  { %v287_v22 = vpop.xlane.xlu1 %286 }
 0x40b   :  { %v289_v23 = vsub.f32 %v278_v11, %v287_v22  ;;  %v284_v24 = vpop.xlane.xlu0 %283 }
 0x40c   :  { %v288_v25 = vsub.f32 %v273_v13, %v284_v24 }
 0x40d   :  { %v292_v26 = vmul.f32 1.442695, %v289_v23 }
 0x40e   :  { %v290_v27 = vmul.f32 1.442695, %v288_v25 }
 0x40f   :  { %3433 = vpow2.f32 %v292_v26 }
 0x410   :  { %3435 = vpow2.f32 %v290_v27 }
 0x413   :  { %v484_v28 = vpop.xlane.xlu0 %483 }
 0x414   :  { %v488_v29 = vsub.f32 %v474_v18, %v484_v28 }
 0x416   :  { %v490_v30 = vmul.f32 1.442695, %v488_v29 }
 0x417   :  { %v487_v31 = vpop.xlane.xlu0 %486 }
 0x418   :  { %3437 = vpow2.f32 %v490_v30  ;;  %v489_v32 = vsub.f32 %v479_v19, %v487_v31 }
 0x419   :  { %v3434_v33 = vpop.eup %3433 }
 0x41a   :  { %v3436_v34 = vpop.eup %3435  ;;  %v492_v35 = vmul.f32 1.442695, %v489_v32  ;;  %v297_v37 = vsel %vm281_vm7, %v3434_v33, 0.0 }
 0x41b   :  { %298 = vadd.xlane.f32.xlu1 %v297_v37  ;;  %v294_v41 = vsel %vm281_vm7, %v3436_v34, 0.0 }
 0x41c   :  { %3439 = vpow2.f32 %v492_v35  ;;  %295 = vadd.xlane.f32.xlu0 %v294_v41 }
 0x422   :  { %v3438_v42 = vpop.eup %3437 }
 0x423   :  { %v494_v43 = vsel %vm281_vm7, %v3438_v42, 0.0 }
 0x424   :  { %495 = vadd.xlane.f32.xlu0 %v494_v43 }
 0x426   :  { %v3440_v44 = vpop.eup %3439 }
 0x427   :  { %v497_v45 = vsel %vm281_vm7, %v3440_v44, 0.0 }
 0x428   :  { %498 = vadd.xlane.f32.xlu1 %v497_v45 }
 0x439   :  { %3361 = vrot.lane.b32.xlu1 %v3678_v56, %s3558_s15 }
 0x43a   :  { %3356 = vrot.lane.b32.xlu0 %v3678_v56, %s3559_s16 }
 0x43d   :  { %3366 = vrot.lane.b32.xlu1 %v3678_v56, %s3560_s0 }
 0x43e   :  { %593 = vrot.lane.b32.xlu0 %v3690_v58, %s3561_s17 }
 0x441   :  { %591 = vrot.lane.b32.xlu1 %v3680_v57, %s3561_s17 }
 0x4a8   :  { %v299_v47 = vpop.xlane.xlu1 %298 }
 0x4a9   :  { %v296_v46 = vpop.xlane.xlu0 %295 }
 0x4aa   :  { %3441 = vrcp.f32 %v296_v46 }
 0x4ab   :  { %3443 = vrcp.f32 %v299_v47 }
 0x4b1   :  { %v496_v48 = vpop.xlane.xlu0 %495 }
 0x4b2   :  { %3445 = vrcp.f32 %v496_v48 }
 0x4b4   :  { %v3442_v49 = vpop.eup %3441 }
 0x4b5   :  { %v499_v50 = vpop.xlane.xlu1 %498  ;;  %v3357_v51 = vpop.permute.xlu0 %3356  ;;  %v302_v52 = vmul.f32 %v3442_v49, %v3436_v34 }
 0x4b6   :  { %3447 = vrcp.f32 %v499_v50  ;;  %v3359_v53 = vunpack.i.h.bf16 %v3357_v51  ;;  %v3358_v54 = vunpack.i.l.bf16 %v3357_v51  ;;  %v3444_v59 = vpop.eup %3443 }
 0x4b7   :  { %2975 = vmatprep.mubr.msk.f32.mxu0 %vm281_vm7, %v302_v52  ;;  %v303_v4 = vmul.f32 %v3444_v59, %v3434_v33 }
 0x4b8   :  { %v3183_v55 = vpack.c.bf16 %v3359_v53, %v3358_v54 }
 0x4b9   :  { %v3362_v60 = vpop.permute.xlu1 %3361  ;;  %v594_v15 = vpop.permute.xlu0 %593 }
 0x4ba   :  { %v3364_v61 = vunpack.i.h.bf16 %v3362_v60  ;;  %v3363_v62 = vunpack.i.l.bf16 %v3362_v60  ;;  %3184 = vmatprep.subr.bf16.mxu0 %v3183_v55 }
 0x4bb   :  { %3186 = vmatpush3.bf16.msra.mxu0 %v3183_v55 }
 0x4bc   :  { %v3446_v63 = vpop.eup %3445  ;;  %v3193_v2 = vpack.c.bf16 %v3364_v61, %v3363_v62 }
 0x4bd   :  { %v3367_v5 = vpop.permute.xlu1 %3366  ;;  %v502_v6 = vmul.f32 %v3446_v63, %v3438_v42 }
 0x4be   :  { %v3369_v7 = vunpack.i.h.bf16 %v3367_v5  ;;  %v3368_v10 = vunpack.i.l.bf16 %v3367_v5  ;;  %2976 = vmatmul.mubr.msk.f32.vlgmr.msra.gmra.mrb[0].mxu0 %vm281_vm7, %v303_v4  ;;  %3194 = vmatprep.subr.bf16.mxu0 %v3193_v2 }
 0x4bf   :  { %3196 = vmatpush3.bf16.msra.mxu0 %v3193_v2  ;;  %2989 = vmatprep.mubr.msk.f32.mxu0 %vm281_vm7, %v502_v6 }
 0x4c0   :  { %v3448_v11 = vpop.eup %3447  ;;  %v3197_v12 = vpack.c.bf16 %v3369_v7, %v3368_v10 }
 0x4c1   :  { %v503_v13 = vmul.f32 %v3448_v11, %v3440_v44  ;;  %v592_v14 = vpop.permute.xlu1 %591 }
 0x4c2   :  { %3199 = vmatprep.subr.msk.bf16.mxu0 %vm3696_vm6, %v3197_v12 }
 0x4c3   :  { %2990 = vmatmul.mubr.msk.f32.vlgmr.msra.gmra.mrb[2].mxu0 %vm281_vm7, %v503_v13 }
 0x4c4   :  { %2996 = vmatprep.mubr.msk.f32.mxu0 %vm195_vm5, %v592_v14 }
 0x4c8   :  { %3202 = vmatpush3.bf16.xpose.msk.msra.mxu0 %vm3696_vm6, %v3197_v12 }
 0x4cf   :  { %2997 = vmatmul.mubr.msk.f32.vlgmr.msra.gmra.mrb[4].mxu0 %vm195_vm5, %v594_v15 }
 0x591   :  { %v3754_v16 = vpop.f32.mrb[0].mxu0 }
 0x592   :  { %v3756_v17 = vpop.f32.mrb[1].mxu0 }
 0x596   :  { %v3758_v18 = vpop.f32.mrb[2].mxu0 }
 0x597   :  { %v3760_v19 = vpop.f32.mrb[3].mxu0 }
 0x5a2   :  { %v2998_v20 = vpop.f32.mrb[4].mxu0 }
 0x5a3   :  { %v679_v21 = vadd.f32 %v2998_v20, %v3715_v8  ;;  %v673_v22 = vpop.f32.mrb[5].mxu0 }
 0x5a4   :  { %v674_v23 = vadd.f32 %v673_v22, %v3720_v9 }
 0x5a5   :  { %v685_v24 = vsel %vm281_vm7, %v679_v21, -inf }
 0x5a6   :  { %686 = vmax.xlane.f32.xlu0 %v685_v24  ;;  %v682_v25 = vsel %vm281_vm7, %v674_v23, -inf }
 0x5a7   :  { %683 = vmax.xlane.f32.xlu1 %v682_v25 }
 0x5b8   :  { %3371 = vrot.lane.b32.xlu1 %v3678_v56, %s3562_s18 }
 0x5bc   :  { %791 = vrot.lane.b32.xlu1 %v3680_v57, %s3563_s19 }
 0x5c0   :  { %793 = vrot.lane.b32.xlu1 %v3690_v58, %s3563_s19 }
 0x633   :  { %v687_v26 = vpop.xlane.xlu0 %686 }
 0x634   :  { %v689_v27 = vsub.f32 %v679_v21, %v687_v26  ;;  %v684_v28 = vpop.xlane.xlu1 %683 }
 0x635   :  { %v688_v29 = vsub.f32 %v674_v23, %v684_v28  ;;  %v1022_v28 = vld [vmem:[%s4178_s4] sm:$0xff] }
 0x636   :  { %v692_v30 = vmul.f32 1.442695, %v689_v27 }
 0x637   :  { %v690_v31 = vmul.f32 1.442695, %v688_v29  ;;  %v1024_v29 = vld [vmem:[%s4178_s4 + $0x10] sm:$0xff] }
 0x638   :  { %3449 = vpow2.f32 %v692_v30  ;;  %v3372_v32 = vpop.permute.xlu1 %3371 }
 0x639   :  { %v3374_v33 = vunpack.i.h.bf16 %v3372_v32  ;;  %v3373_v34 = vunpack.i.l.bf16 %v3372_v32  ;;  %3451 = vpow2.f32 %v690_v31  ;;  %v1025_v31 = vld [vmem:[%s4178_s4 + $0x18] sm:$0xff] }
 0x63a   :  { %v3221_v32 = vpack.c.bf16 %v1025_v31, %v1024_v29 }
 0x63b   :  { %v3203_v35 = vpack.c.bf16 %v3374_v33, %v3373_v34 }
 0x63c   :  { %v792_v52 = vpop.permute.xlu1 %791 }
 0x63d   :  { %3204 = vmatprep.subr.bf16.mxu1 %v3203_v35 }
 0x63e   :  { %3206 = vmatpush3.bf16.msra.mxu1 %v3203_v35 }
 0x640   :  { %v794_v53 = vpop.permute.xlu1 %793 }
 0x642   :  { %v3450_v37 = vpop.eup %3449 }
 0x643   :  { %v697_v57 = vsel %vm281_vm7, %v3450_v37, 0.0  ;;  %v3452_v41 = vpop.eup %3451 }
 0x644   :  { %698 = vadd.xlane.f32.xlu0 %v697_v57  ;;  %v694_v58 = vsel %vm281_vm7, %v3452_v41, 0.0 }
 0x648   :  { %695 = vadd.xlane.f32.xlu0 %v694_v58 }
 0x65e   :  { %3376 = vrot.lane.b32.xlu0 %v3678_v56, %s3564_s20 }
 0x6d1   :  { %v699_v42 = vpop.xlane.xlu0 %698 }
 0x6d2   :  { %3453 = vrcp.f32 %v699_v42 }
 0x6d5   :  { %v696_v43 = vpop.xlane.xlu0 %695 }
 0x6d6   :  { %3455 = vrcp.f32 %v696_v43 }
 0x6d9   :  { %v3377_v44 = vpop.permute.xlu0 %3376 }
 0x6da   :  { %v3379_v45 = vunpack.i.h.bf16 %v3377_v44  ;;  %v3378_v46 = vunpack.i.l.bf16 %v3377_v44 }
 0x6dc   :  { %v3207_v47 = vpack.c.bf16 %v3379_v45, %v3378_v46  ;;  %v3454_v48 = vpop.eup %3453 }
 0x6dd   :  { %v703_v51 = vmul.f32 %v3454_v48, %v3450_v37 }
 0x6de   :  { %3209 = vmatprep.subr.msk.bf16.mxu1 %vm3696_vm6, %v3207_v47 }
 0x6e0   :  { %v3456_v49 = vpop.eup %3455 }
 0x6e1   :  { %v702_v50 = vmul.f32 %v3456_v49, %v3452_v41 }
 0x6e3   :  { %3003 = vmatprep.mubr.msk.f32.mxu1 %vm281_vm7, %v702_v50 }
 0x6e4   :  { %3004 = vmatmul.mubr.msk.f32.vlgmr.msra.gmra.mrb[6].mxu1 %vm281_vm7, %v703_v51 }
 0x6e5   :  { %3212 = vmatpush3.bf16.xpose.msk.msra.mxu1 %vm3696_vm6, %v3207_v47  ;;  %3010 = vmatprep.mubr.msk.f32.mxu1 %vm195_vm5, %v792_v52 }
 0x6ec   :  { %3011 = vmatmul.mubr.msk.f32.vlgmr.msra.gmra.mrb[8].mxu1 %vm195_vm5, %v794_v53 }
 0x7b7   :  { %v3005_v54 = vpop.f32.mrb[6].mxu1 }
 0x7b8   :  { %v782_v55 = vpop.f32.mrb[7].mxu1 }
 0x7bf   :  { %v3012_v59 = vpop.f32.mrb[8].mxu1 }
 0x7c0   :  { %v879_v60 = vadd.f32 %v3012_v59, %v3715_v8  ;;  %v873_v61 = vpop.f32.mrb[9].mxu1 }
 0x7c1   :  { %v874_v62 = vadd.f32 %v873_v61, %v3720_v9 }
 0x7c2   :  { %v885_v63 = vsel %vm281_vm7, %v879_v60, -inf }
 0x7c3   :  { %886 = vmax.xlane.f32.xlu0 %v885_v63  ;;  %v882_v2 = vsel %vm281_vm7, %v874_v62, -inf }
 0x7c4   :  { %883 = vmax.xlane.f32.xlu1 %v882_v2 }
 0x7d5   :  { %3381 = vrot.lane.b32.xlu1 %v3678_v56, %s3565_s21 }
 0x7d9   :  { %995 = vrot.lane.b32.xlu1 %v3758_v18, %s4189_s22 }
 0x7dd   :  { %1001 = vrot.lane.b32.xlu1 %v782_v55, %s4187_s23 }
 0x7e1   :  { %1003 = vrot.lane.b32.xlu1 %v3005_v54, %s4187_s23 }
 0x850   :  { %v887_v4 = vpop.xlane.xlu0 %886 }
 0x851   :  { %v889_v5 = vsub.f32 %v879_v60, %v887_v4  ;;  %v884_v6 = vpop.xlane.xlu1 %883 }
 0x852   :  { %v888_v7 = vsub.f32 %v874_v62, %v884_v6 }
 0x853   :  { %v892_v10 = vmul.f32 1.442695, %v889_v5 }
 0x854   :  { %v890_v11 = vmul.f32 1.442695, %v888_v7  ;;  %v1165_v7 = vld [vmem:[%s4179_s5] sm:$0xff] }
 0x855   :  { %v3382_v12 = vpop.permute.xlu1 %3381 }
 0x856   :  { %3457 = vpow2.f32 %v890_v11  ;;  %v3384_v13 = vunpack.i.h.bf16 %v3382_v12  ;;  %v3383_v14 = vunpack.i.l.bf16 %v3382_v12  ;;  %v1167_v11 = vld [vmem:[%s4179_s5 + $0x10] sm:$0xff] }
 0x857   :  { %3459 = vpow2.f32 %v892_v10  ;;  %v1166_v10 = vld [vmem:[%s4179_s5 + $0x8] sm:$0xff] }
 0x858   :  { %v3213_v56 = vpack.c.bf16 %v3384_v13, %v3383_v14  ;;  %v3225_v12 = vpack.c.bf16 %v1166_v10, %v1165_v7  ;;  %v1168_v13 = vld [vmem:[%s4179_s5 + $0x18] sm:$0xff] }
 0x859   :  { %v996_v35 = vpop.permute.xlu1 %995  ;;  %v3229_v14 = vpack.c.bf16 %v1168_v13, %v1167_v11 }
 0x85a   :  { %3214 = vmatprep.subr.bf16.mxu0 %v3213_v56  ;;  %v1016_v43 = vsel %vm195_vm5, %v3754_v16, %v996_v35  ;;  %3226 = vmatprep.subr.bf16.mxu1 %v3225_v12 }
 0x85b   :  { %3216 = vmatpush3.bf16.msra.mxu0 %v3213_v56  ;;  %3228 = vmatpush3.bf16.msra.mxu1 %v3225_v12  ;;  %v1259_v56 = vld [vmem:[%s4181_s7] sm:$0xff] }
 0x85c   :  { %3230 = vmatprep.subr.bf16.mxu1 %v3229_v14 }
 0x85d   :  { %v1002_v37 = vpop.permute.xlu1 %1001 }
 0x85f   :  { %3232 = vmatpush3.bf16.msra.mxu1 %v3229_v14 }
 0x860   :  { %v3458_v15 = vpop.eup %3457 }
 0x861   :  { %v894_v18 = vsel %vm281_vm7, %v3458_v15, 0.0  ;;  %v3460_v20 = vpop.eup %3459  ;;  %v1004_v41 = vpop.permute.xlu1 %1003 }
 0x862   :  { %895 = vadd.xlane.f32.xlu0 %v894_v18  ;;  %v897_v21 = vsel %vm281_vm7, %v3460_v20, 0.0  ;;  %v1018_v46 = vsel %vm281_vm7, %v1016_v43, %v1004_v41  ;;  %v1261_v18 = vld [vmem:[%s4181_s7 + $0x10] sm:$0xff]  ;;  %v1155_v43 = vsub.s32 2, %v3656_v36 }
 0x866   :  { %898 = vadd.xlane.f32.xlu0 %v897_v21  ;;  %v1262_v21 = vld [vmem:[%s4181_s7 + $0x18] sm:$0xff] }
 0x87c   :  { %993 = vrot.lane.b32.xlu0 %v3760_v19, %s4189_s22  ;;  %v1023_v19 = vld [vmem:[%s4178_s4 + $0x8] sm:$0xff] }
 0x87d   :  { %v3217_v30 = vpack.c.bf16 %v1023_v19, %v1022_v28 }
 0x87f   :  { %3218 = vmatprep.subr.bf16.mxu0 %v3217_v30 }
 0x8ef   :  { %v896_v22 = vpop.xlane.xlu0 %895 }
 0x8f0   :  { %3461 = vrcp.f32 %v896_v22  ;;  %v3237_v22 = vpack.c.bf16 %v1262_v21, %v1261_v18 }
 0x8f3   :  { %v899_v23 = vpop.xlane.xlu0 %898 }
 0x8f4   :  { %3463 = vrcp.f32 %v899_v23  ;;  %v1263_v23 = vld [vmem:[%s4181_s7 + $0x20] sm:$0xff] }
 0x8f7   :  { %v994_v57 = vpop.permute.xlu0 %993 }
 0x8f8   :  { %v1015_v58 = vsel %vm195_vm5, %v3756_v17, %v994_v57  ;;  %v1028_v17 = vsub.s32 4, %v3656_v36 }
 0x8f9   :  { %v1017_v44 = vsel %vm281_vm7, %v1015_v58, %v1002_v37 }
 0x8fa   :  { %v3462_v24 = vpop.eup %3461  ;;  %v1029_v49 = vrot.slane %v3664_v39, %v1028_v17 }
 0x8fb   :  { %v902_v25 = vmul.f32 %v3462_v24, %v3458_v15  ;;  %v1260_v15 = vld [vmem:[%s4181_s7 + $0x8] sm:$0xff] }
 0x8fc   :  { %v1264_v24 = vld [vmem:[%s4181_s7 + $0x28] sm:$0xff] }
 0x8fd   :  { %3017 = vmatprep.mubr.msk.f32.mxu0 %vm281_vm7, %v902_v25  ;;  %v3241_v25 = vpack.c.bf16 %v1264_v24, %v1263_v23 }
 0x8fe   :  { %v3464_v26 = vpop.eup %3463 }
 0x8ff   :  { %v903_v27 = vmul.f32 %v3464_v26, %v3460_v20  ;;  %v3233_v20 = vpack.c.bf16 %v1260_v15, %v1259_v56 }
 0x901   :  { %3018 = vmatmul.mubr.msk.f32.vlgmr.msra.gmra.mrb[6].mxu0 %vm281_vm7, %v903_v27 }
 0x902   :  { %3220 = vmatpush3.bf16.msra.mxu0 %v3217_v30 }
 0x903   :  { %3222 = vmatprep.subr.bf16.mxu0 %v3221_v32 }
 0x906   :  { %3224 = vmatpush3.bf16.msra.mxu0 %v3221_v32 }
 0x907   :  { %3234 = vmatprep.subr.bf16.mxu0 %v3233_v20 }
 0x9d4   :  { %v3019_v33 = vpop.f32.mrb[6].mxu0 }
 0x9d5   :  { %1011 = vrot.lane.b32.xlu1 %v3019_v33, %s4185_s24  ;;  %v982_v34 = vpop.f32.mrb[7].mxu0 }
 0x9d6   :  { %1009 = vrot.lane.b32.xlu0 %v982_v34, %s4185_s24 }
 0xa47   :  { %v1012_v42 = vpop.permute.xlu1 %1011 }
 0xa48   :  { %v1010_v45 = vpop.permute.xlu0 %1009  ;;  %v1021_v48 = vsel %vm1019_vm8, %v1018_v46, %v1012_v42 }
 0xa49   :  { %v1020_v47 = vsel %vm1019_vm8, %v1017_v44, %v1010_v45  ;;  %v1161_v44 = vsub.s32 3, %v3656_v36  ;;  %v1156_v45 = vrot.slane %v3664_v39, %v1155_v43 }
 0xa4a   :  { %3028 = vmatprep.mubr.msk.f32.mxu0 %vm41_vm0, %v1020_v47 }
 0xa4b   :  { %3029 = vmatmul.mubr.msk.f32.vlgmr.msra.gmra.mrb[8].mxu0 %vm41_vm0, %v1021_v48  ;;  %v1162_v48 = vrot.slane %v3664_v39, %v1161_v44 }
 0xa4c   :  { %3236 = vmatpush3.bf16.msra.mxu0 %v3233_v20 }
 0xa4d   :  { %3238 = vmatprep.subr.bf16.mxu0 %v3237_v22 }
 0xa50   :  { %3240 = vmatpush3.bf16.msra.mxu0 %v3237_v22 }
 0xa51   :  { %3242 = vmatprep.subr.bf16.mxu0 %v3241_v25 }
 0xa54   :  { %3244 = vmatpush3.bf16.msra.mxu0 %v3241_v25 }
 0xb1e   :  { %v3030_v16 = vpop.f32.mrb[8].mxu0 }
 0xb1f   :  { %v1108_v50 = vadd.f32 %v3030_v16, %v1029_v49  ;;  %v1102_v51 = vpop.f32.mrb[9].mxu0 }
 0xb20   :  { %v1103_v52 = vadd.f32 %v1102_v51, %v1029_v49 }
 0xb21   :  { %v3829_v53 = vadd.f32 %v1108_v50, %v3634_v1 }
 0xb22   :  { %v3832_v54 = vadd.f32 %v1103_v52, %v3629_v0 }
 0xb23   :  { %v1116_v55 = vsel %vm41_vm0, %v3829_v53, 0.0 }
 0xb24   :  { %1117 = vadd.xlane.f32.xlu1 %v1116_v55  ;;  %v1113_v59 = vsel %vm41_vm0, %v3832_v54, 0.0 }
 0xb25   :  { %1114 = vadd.xlane.f32.xlu0 %v1113_v59  ;;  %v1265_v59 = vld [vmem:[%s4181_s7 + $0x30] sm:$0xff] }
 0xbb1   :  { %v1118_v60 = vpop.xlane.xlu1 %1117 }
 0xbb2   :  { %v1120_v61 = vmul.f32 0.03125, %v1118_v60  ;;  %v1115_v62 = vpop.xlane.xlu0 %1114  ;;  %v1266_v60 = vld [vmem:[%s4181_s7 + $0x38] sm:$0xff] }
 0xbb3   :  { %v1119_v63 = vmul.f32 0.03125, %v1115_v62  ;;  %v2771_v62 = vld [vmem:[%s4180_s6] ss:$0 sm:$0xff] }
 0xbb4   :  { %v3839_v2 = vsub.f32 %v3829_v53, %v1120_v61  ;;  %v3245_v61 = vpack.c.bf16 %v1266_v60, %v1265_v59 }
 0xbb5   :  { %v1121_v1 = vsub.f32 %v3832_v54, %v1119_v63 }
 0xbb6   :  { %v1124_v5 = vmul.f32 %v3839_v2, %v3839_v2  ;;  %3246 = vmatprep.subr.bf16.mxu0 %v3245_v61 }
 0xbb7   :  { %v1123_v4 = vmul.f32 %v1121_v1, %v1121_v1  ;;  %3248 = vmatpush3.bf16.msra.mxu0 %v3245_v61 }
 0xbb8   :  { %v1128_v6 = vsel %vm41_vm0, %v1124_v5, 0.0 }
 0xbb9   :  { %v1125_v0 = vsel %vm41_vm0, %v1123_v4, 0.0 }
 0xbba   :  { %1126 = vadd.xlane.f32.xlu0 %v1125_v0 }
 0xbbe   :  { %1129 = vadd.xlane.f32.xlu0 %v1128_v6  ;;  %v1269_v6 = vsub.s32 5, %v3656_v36 }
 0xbc0   :  { %v1270_v7 = vrot.slane %v3664_v39, %v1269_v6 }
 0xc47   :  { %v1127_v26 = vpop.xlane.xlu0 %1126 }
 0xc48   :  { %v1131_v27 = vmul.f32 0.032258064, %v1127_v26 }
 0xc4a   :  { %3465 = vrsqrt.f32 %v1131_v27  ;;  %vm1135_vm9 = vcmp.eq.f32.partialorder %v1131_v27, inf  ;;  %v1138_v31 = vand.u32 2147483648, %v1131_v27  ;;  %vm1137_vm10 = vcmp.eq.f32.partialorder %v1131_v27, 0.0 }
 0xc4b   :  { %v1130_v28 = vpop.xlane.xlu0 %1129 }
 0xc4c   :  { %v1132_v19 = vmul.f32 0.032258064, %v1130_v28  ;;  %v2778_v28 = vld [vmem:[%s4176_s2 + $0x28] sm:$0xff] }
 0xc4e   :  { %3467 = vrsqrt.f32 %v1132_v19  ;;  %vm1142_vm11 = vcmp.eq.f32.partialorder %v1132_v19, inf  ;;  %v1145_v57 = vand.u32 2147483648, %v1132_v19  ;;  %vm1144_vm12 = vcmp.eq.f32.partialorder %v1132_v19, 0.0 }
 0xc54   :  { %v3466_v29 = vpop.eup %3465 }
 0xc55   :  { %v1134_v30 = vmul.f32 %v3466_v29, %v1131_v27 }
 0xc57   :  { %v1136_v32 = vsel %vm1135_vm9, %v1131_v27, %v1134_v30  ;;  %v2777_v27 = vld [vmem:[%s4176_s2 + $0x20] sm:$0xff]  ;;  %v2780_v30 = vld [vmem:[%s4176_s2 + $0x38] sm:$0xff] }
 0xc58   :  { %v3468_v33 = vpop.eup %3467  ;;  %v1139_v34 = vsel %vm1137_vm10, %v1138_v31, %v1136_v32  ;;  %v3249_v29 = vpack.c.bf16 %v2778_v28, %v2777_v27 }
 0xc59   :  { %v1147_v35 = vadd.f32 1e-06, %v1139_v34  ;;  %v1141_v37 = vmul.f32 %v3468_v33, %v1132_v19 }
 0xc5a   :  { %3250 = vmatprep.subr.bf16.mxu1 %v3249_v29 }
 0xc5b   :  { %3469 = vrcp.f32 %v1147_v35  ;;  %v1143_v41 = vsel %vm1142_vm11, %v1132_v19, %v1141_v37  ;;  %v2779_v19 = vld [vmem:[%s4176_s2 + $0x30] sm:$0xff] }
 0xc5c   :  { %v1146_v58 = vsel %vm1144_vm12, %v1145_v57, %v1143_v41  ;;  %v3253_v31 = vpack.c.bf16 %v2780_v30, %v2779_v19 }
 0xc5d   :  { %v1148_v42 = vadd.f32 1e-06, %v1146_v58 }
 0xc5f   :  { %3471 = vrcp.f32 %v1148_v42 }
 0xc65   :  { %v3470_v46 = vpop.eup %3469 }
 0xc66   :  { %v1151_v47 = vmul.f32 %v3470_v46, %v1121_v1 }
 0xc68   :  { %v1157_v49 = vmul.f32 %v1156_v45, %v1151_v47 }
 0xc69   :  { %v3472_v16 = vpop.eup %3471 }
 0xc6a   :  { %v1152_v50 = vmul.f32 %v3472_v16, %v3839_v2  ;;  %v1163_v51 = vadd.f32 %v1162_v48, %v1157_v49 }
 0xc6c   :  { %v1158_v52 = vmul.f32 %v1156_v45, %v1152_v50  ;;  %3039 = vmatprep.mubr.msk.f32.mxu1 %vm41_vm0, %v1163_v51  ;;  %v3931_v51 = vld [vmem:[%s4182_s8 + $0x8] sm:$0x3f] }
 0xc6e   :  { %v1164_v55 = vadd.f32 %v1162_v48, %v1158_v52  ;;  %v1400_v52 = vrot.slane %v3931_v51, %v3659_v38 }
 0xc70   :  { %3040 = vmatmul.mubr.msk.f32.vlgmr.msra.gmra.mrb[10].mxu1 %vm41_vm0, %v1164_v55 }
 0xc71   :  { %3252 = vmatpush3.bf16.msra.mxu1 %v3249_v29 }
 0xc72   :  { %3254 = vmatprep.subr.bf16.mxu1 %v3253_v31 }
 0xc75   :  { %3256 = vmatpush3.bf16.msra.mxu1 %v3253_v31 }
 0xd43   :  { %v3041_v63 = vpop.f32.mrb[10].mxu1 }
 0xd44   :  { %v1254_v2 = vadd.f32 %v3041_v63, %v2771_v62  ;;  %v1248_v1 = vpop.f32.mrb[11].mxu1 }
 0xd45   :  { %v1249_v4 = vadd.f32 %v2771_v62, %v1248_v1  ;;  %v1406_v62 = vrot.slane %v3931_v51, %v3667_v40 }
 0xd46   :  { %v1258_v5 = vmax.f32 %v1254_v2, 0.0 }
 0xd47   :  { %v1257_v0 = vmax.f32 %v1249_v4, 0.0 }
 0xd49   :  { %3058 = vmatprep.mubr.msk.f32.mxu0 %vm1271_vm13, %v1257_v0  ;;  %v2782_v0 = vld [vmem:[%s4177_s3 + $0x1] ss:$0 sm:$0xff] }
 0xd4a   :  { %3059 = vmatmul.mubr.msk.f32.vlgmr.msra.gmra.mrb[10].mxu0 %vm1271_vm13, %v1258_v5 }
 0xe1d   :  { %v3060_v10 = vpop.f32.mrb[10].mxu0 }
 0xe1e   :  { %v1350_v11 = vadd.f32 %v3060_v10, %v1270_v7  ;;  %v1344_v12 = vpop.f32.mrb[11].mxu0 }
 0xe1f   :  { %v1345_v13 = vadd.f32 %v1344_v12, %v1270_v7 }
 0xe20   :  { %v3903_v14 = vadd.f32 %v1350_v11, %v3829_v53 }
 0xe21   :  { %v3906_v56 = vadd.f32 %v1345_v13, %v3832_v54 }
 0xe22   :  { %v1360_v15 = vsel %vm41_vm0, %v3903_v14, 0.0 }
 0xe23   :  { %1361 = vadd.xlane.f32.xlu1 %v1360_v15  ;;  %v1357_v18 = vsel %vm41_vm0, %v3906_v56, 0.0 }
 0xe24   :  { %1358 = vadd.xlane.f32.xlu0 %v1357_v18 }
 0xeb0   :  { %v1362_v20 = vpop.xlane.xlu1 %1361 }
 0xeb1   :  { %v1364_v39 = vmul.f32 0.03125, %v1362_v20  ;;  %v1359_v21 = vpop.xlane.xlu0 %1358 }
 0xeb2   :  { %v1363_v22 = vmul.f32 0.03125, %v1359_v21 }
 0xeb3   :  { %v1366_v23 = vsub.f32 %v3903_v14, %v1364_v39 }
 0xeb4   :  { %v1365_v53 = vsub.f32 %v3906_v56, %v1363_v22 }
 0xeb5   :  { %v1368_v24 = vmul.f32 %v1366_v23, %v1366_v23 }
 0xeb6   :  { %v1367_v25 = vmul.f32 %v1365_v53, %v1365_v53 }
 0xeb7   :  { %v1372_v54 = vsel %vm41_vm0, %v1368_v24, 0.0 }
 0xeb8   :  { %1373 = vadd.xlane.f32.xlu1 %v1372_v54  ;;  %v1369_v26 = vsel %vm41_vm0, %v1367_v25, 0.0 }
 0xeb9   :  { %1370 = vadd.xlane.f32.xlu0 %v1369_v26 }
 0xf45   :  { %v1374_v32 = vpop.xlane.xlu1 %1373 }
 0xf46   :  { %v1376_v33 = vmul.f32 0.032258064, %v1374_v32  ;;  %v1371_v34 = vpop.xlane.xlu0 %1370 }
 0xf47   :  { %v1375_v35 = vmul.f32 0.032258064, %v1371_v34 }
 0xf48   :  { %3473 = vrsqrt.f32 %v1376_v33  ;;  %vm1386_vm14 = vcmp.eq.f32.partialorder %v1376_v33, inf  ;;  %v1389_v58 = vand.u32 2147483648, %v1376_v33  ;;  %vm1388_vm15 = vcmp.eq.f32.partialorder %v1376_v33, 0.0 }
 0xf49   :  { %3475 = vrsqrt.f32 %v1375_v35  ;;  %vm1379_vm1 = vcmp.eq.f32.partialorder %v1375_v35, inf  ;;  %v1382_v46 = vand.u32 2147483648, %v1375_v35  ;;  %vm1381_vm2 = vcmp.eq.f32.partialorder %v1375_v35, 0.0 }
 0xf52   :  { %v3474_v37 = vpop.eup %3473 }
 0xf53   :  { %v3476_v57 = vpop.eup %3475  ;;  %v1385_v41 = vmul.f32 %v3474_v37, %v1376_v33 }
 0xf54   :  { %v1378_v42 = vmul.f32 %v3476_v57, %v1375_v35 }
 0xf55   :  { %v1387_v45 = vsel %vm1386_vm14, %v1376_v33, %v1385_v41 }
 0xf56   :  { %v1390_v47 = vsel %vm1388_vm15, %v1389_v58, %v1387_v45  ;;  %v1380_v48 = vsel %vm1379_vm1, %v1375_v35, %v1378_v42 }
 0xf57   :  { %v1392_v49 = vadd.f32 1e-06, %v1390_v47  ;;  %v1383_v16 = vsel %vm1381_vm2, %v1382_v46, %v1380_v48 }
 0xf58   :  { %v1391_v50 = vadd.f32 1e-06, %v1383_v16 }
 0xf59   :  { %3477 = vrcp.f32 %v1392_v49 }
 0xf5a   :  { %3479 = vrcp.f32 %v1391_v50 }
 0xf63   :  { %v3478_v55 = vpop.eup %3477 }
 0xf64   :  { %v3480_v59 = vpop.eup %3479  ;;  %v1396_v60 = vmul.f32 %v3478_v55, %v1366_v23 }
 0xf65   :  { %v1395_v61 = vmul.f32 %v3480_v59, %v1365_v53 }
 0xf66   :  { %v1402_v63 = vmul.f32 %v1400_v52, %v1396_v60 }
 0xf67   :  { %v1401_v2 = vmul.f32 %v1400_v52, %v1395_v61 }
 0xf68   :  { %v1408_v4 = vadd.f32 %v1406_v62, %v1402_v63 }
 0xf69   :  { %v1407_v1 = vadd.f32 %v1406_v62, %v1401_v2 }
 0xf6b   :  { %3069 = vmatprep.mubr.msk.f32.mxu1 %vm41_vm0, %v1407_v1 }
 0xf6c   :  { %3070 = vmatmul.mubr.msk.f32.vlgmr.msra.gmra.mrb[12].mxu1 %vm41_vm0, %v1408_v4 }
0x103f   :  { %v3071_v5 = vpop.f32.mrb[12].mxu1 }
0x1040   :  { %v1500_v7 = vadd.f32 %v3071_v5, %v2782_v0  ;;  %v1494_v10 = vpop.f32.mrb[13].mxu1 }
0x1041   :  { %v1495_v11 = vadd.f32 %v2782_v0, %v1494_v10 }
0x1042   :  { %v3954_v15 = vmul.f32 0.35355338, %v1500_v7 }
0x1043   :  { %v3942_v12 = vpack.i.bf16 %v1500_v7, %v1495_v11  ;;  %v3944_v13 = vmul.f32 0.35355338, %v1495_v11 }
0x1045   :  { %3391 = vrot.lane.b32.xlu1 %v3942_v12, %s3555_s28  ;;  %3386 = vrot.lane.b32.xlu0 %v3942_v12, %s3556_s29 }
0x1046   :  { %3076 = vmatprep.mubr.msk.f32.mxu1 %vm195_vm5, %v3944_v13 }
0x1049   :  { %1705 = vrot.lane.b32.xlu1 %v3944_v13, %s3557_s30 }
0x104d   :  { %1707 = vrot.lane.b32.xlu1 %v3954_v15, %s3557_s30 }
0x10b7   :  { %v3392_v18 = vpop.permute.xlu1 %3391  ;;  %v3387_v20 = vpop.permute.xlu0 %3386 }
0x10b8   :  { %v3394_v39 = vunpack.i.h.bf16 %v3392_v18  ;;  %v3393_v21 = vunpack.i.l.bf16 %v3392_v18  ;;  %v3389_v22 = vunpack.i.h.bf16 %v3387_v20  ;;  %v3388_v23 = vunpack.i.l.bf16 %v3387_v20 }
0x10ba   :  { %v3257_v53 = vpack.c.bf16 %v3389_v22, %v3388_v23  ;;  %v3267_v24 = vpack.c.bf16 %v3394_v39, %v3393_v21 }
0x10bb   :  { %v1706_v25 = vpop.permute.xlu1 %1705 }
0x10bc   :  { %3259 = vmatprep.subr.msk.bf16.mxu1 %vm3696_vm6, %v3257_v53 }
0x10bd   :  { %3262 = vmatpush3.bf16.xpose.msk.msra.mxu1 %vm3696_vm6, %v3257_v53 }
0x10be   :  { %3269 = vmatprep.subr.msk.bf16.mxu1 %vm3696_vm6, %v3267_v24 }
0x10bf   :  { %v1708_v54 = vpop.permute.xlu1 %1707 }
0x10c4   :  { %3077 = vmatmul.mubr.msk.f32.vlgmr.msra.gmra.mrb[14].mxu1 %vm195_vm5, %v3954_v15 }
0x10c5   :  { %3272 = vmatpush3.bf16.xpose.msk.msra.mxu1 %vm3696_vm6, %v3267_v24  ;;  %3090 = vmatprep.mubr.msk.f32.mxu1 %vm195_vm5, %v1706_v25 }
0x10cc   :  { %3091 = vmatmul.mubr.msk.f32.vlgmr.msra.gmra.mrb[16].mxu1 %vm195_vm5, %v1708_v54 }
0x1197   :  { %v3078_v26 = vpop.f32.mrb[14].mxu1 }
0x1198   :  { %v1593_v27 = vadd.f32 %v3078_v26, %v3715_v8  ;;  %v1587_v28 = vpop.f32.mrb[15].mxu1 }
0x1199   :  { %v1588_v19 = vadd.f32 %v1587_v28, %v3720_v9 }
0x119a   :  { %v1599_v29 = vsel %vm281_vm7, %v1593_v27, -inf }
0x119b   :  { %1600 = vmax.xlane.f32.xlu1 %v1599_v29  ;;  %v1596_v30 = vsel %vm281_vm7, %v1588_v19, -inf }
0x119c   :  { %1597 = vmax.xlane.f32.xlu0 %v1596_v30 }
0x119f   :  { %v3092_v31 = vpop.f32.mrb[16].mxu1 }
0x11a0   :  { %v1787_v32 = vpop.f32.mrb[17].mxu1  ;;  %v1793_v34 = vadd.f32 %v3092_v31, %v3715_v8 }
0x11a1   :  { %v1788_v33 = vadd.f32 %v1787_v32, %v3720_v9 }
0x11a2   :  { %v1799_v37 = vsel %vm281_vm7, %v1793_v34, -inf }
0x11a3   :  { %v1796_v35 = vsel %vm281_vm7, %v1788_v33, -inf }
0x11a4   :  { %1797 = vmax.xlane.f32.xlu0 %v1796_v35 }
0x11a8   :  { %1800 = vmax.xlane.f32.xlu0 %v1799_v37 }
0x1228   :  { %v1601_v57 = vpop.xlane.xlu1 %1600 }
0x1229   :  { %v1603_v41 = vsub.f32 %v1593_v27, %v1601_v57  ;;  %v1598_v58 = vpop.xlane.xlu0 %1597 }
0x122a   :  { %v1602_v42 = vsub.f32 %v1588_v19, %v1598_v58 }
0x122b   :  { %v1606_v45 = vmul.f32 1.442695, %v1603_v41  ;;  %v3529_v41 = vld [vmem:[%s4175_s1 + $0x8] sm:$0xff] }
0x122c   :  { %v1604_v46 = vmul.f32 1.442695, %v1602_v42 }
0x122d   :  { %3481 = vpow2.f32 %v1606_v45  ;;  %v3530_v45 = vld [vmem:[%s4175_s1] sm:$0xff]  ;;  %s4193_s1 = smov 8  }
0x122e   :  { %3483 = vpow2.f32 %v1604_v46 }
0x1231   :  { %v1798_v47 = vpop.xlane.xlu0 %1797 }
0x1232   :  { %v1802_v48 = vsub.f32 %v1788_v33, %v1798_v47 }
0x1234   :  { %v1804_v49 = vmul.f32 1.442695, %v1802_v48 }
0x1235   :  { %v1801_v9 = vpop.xlane.xlu0 %1800 }
0x1236   :  { %3485 = vpow2.f32 %v1804_v49  ;;  %v1803_v8 = vsub.f32 %v1793_v34, %v1801_v9 }
0x1237   :  { %v3482_v16 = vpop.eup %3481 }
0x1238   :  { %v3484_v50 = vpop.eup %3483  ;;  %v1806_v52 = vmul.f32 1.442695, %v1803_v8  ;;  %v1611_v55 = vsel %vm281_vm7, %v3482_v16, 0.0 }
0x1239   :  { %1612 = vadd.xlane.f32.xlu1 %v1611_v55  ;;  %v1608_v59 = vsel %vm281_vm7, %v3484_v50, 0.0 }
0x123a   :  { %3487 = vpow2.f32 %v1806_v52  ;;  %1609 = vadd.xlane.f32.xlu0 %v1608_v59 }
0x1240   :  { %v3486_v60 = vpop.eup %3485 }
0x1241   :  { %v1808_v61 = vsel %vm281_vm7, %v3486_v60, 0.0 }
0x1242   :  { %1809 = vadd.xlane.f32.xlu0 %v1808_v61 }
0x1244   :  { %v3488_v62 = vpop.eup %3487 }
0x1245   :  { %v1811_v63 = vsel %vm281_vm7, %v3488_v62, 0.0 }
0x1246   :  { %1812 = vadd.xlane.f32.xlu1 %v1811_v63 }
0x1257   :  { %3401 = vrot.lane.b32.xlu1 %v3942_v12, %s3558_s15  ;;  %s4194_s15 = smov 16  }
0x1258   :  { %3396 = vrot.lane.b32.xlu0 %v3942_v12, %s3559_s16 }
0x125b   :  { %3406 = vrot.lane.b32.xlu1 %v3942_v12, %s3560_s0 }
0x125c   :  { %1907 = vrot.lane.b32.xlu0 %v3954_v15, %s3561_s17 }
0x125f   :  { %1905 = vrot.lane.b32.xlu1 %v3944_v13, %s3561_s17 }
0x12c6   :  { %v1613_v1 = vpop.xlane.xlu1 %1612 }
0x12c7   :  { %v1610_v2 = vpop.xlane.xlu0 %1609 }
0x12c8   :  { %3489 = vrcp.f32 %v1610_v2 }
0x12c9   :  { %3491 = vrcp.f32 %v1613_v1 }
0x12cf   :  { %v1810_v4 = vpop.xlane.xlu0 %1809 }
0x12d0   :  { %3493 = vrcp.f32 %v1810_v4 }
0x12d2   :  { %v3490_v0 = vpop.eup %3489 }
0x12d3   :  { %v1813_v5 = vpop.xlane.xlu1 %1812  ;;  %v3397_v7 = vpop.permute.xlu0 %3396  ;;  %v1616_v10 = vmul.f32 %v3490_v0, %v3484_v50 }
0x12d4   :  { %3495 = vrcp.f32 %v1813_v5  ;;  %v3399_v11 = vunpack.i.h.bf16 %v3397_v7  ;;  %v3398_v18 = vunpack.i.l.bf16 %v3397_v7  ;;  %v3492_v39 = vpop.eup %3491 }
0x12d5   :  { %3083 = vmatprep.mubr.msk.f32.mxu0 %vm281_vm7, %v1616_v10  ;;  %v1617_v24 = vmul.f32 %v3492_v39, %v3482_v16 }
0x12d6   :  { %v3263_v20 = vpack.c.bf16 %v3399_v11, %v3398_v18 }
0x12d7   :  { %v3402_v21 = vpop.permute.xlu1 %3401  ;;  %v1908_v32 = vpop.permute.xlu0 %1907 }
0x12d8   :  { %v3404_v22 = vunpack.i.h.bf16 %v3402_v21  ;;  %v3403_v23 = vunpack.i.l.bf16 %v3402_v21  ;;  %3264 = vmatprep.subr.bf16.mxu0 %v3263_v20 }
0x12d9   :  { %3266 = vmatpush3.bf16.msra.mxu0 %v3263_v20 }
0x12da   :  { %v3494_v53 = vpop.eup %3493  ;;  %v3273_v25 = vpack.c.bf16 %v3404_v22, %v3403_v23 }
0x12db   :  { %v3407_v54 = vpop.permute.xlu1 %3406  ;;  %v1816_v26 = vmul.f32 %v3494_v53, %v3486_v60 }
0x12dc   :  { %v3409_v27 = vunpack.i.h.bf16 %v3407_v54  ;;  %v3408_v28 = vunpack.i.l.bf16 %v3407_v54  ;;  %3084 = vmatmul.mubr.msk.f32.vlgmr.msra.gmra.mrb[12].mxu0 %vm281_vm7, %v1617_v24  ;;  %3274 = vmatprep.subr.bf16.mxu0 %v3273_v25 }
0x12dd   :  { %3276 = vmatpush3.bf16.msra.mxu0 %v3273_v25  ;;  %3097 = vmatprep.mubr.msk.f32.mxu0 %vm281_vm7, %v1816_v26 }
0x12de   :  { %v3496_v19 = vpop.eup %3495  ;;  %v3277_v29 = vpack.c.bf16 %v3409_v27, %v3408_v28 }
0x12df   :  { %v1817_v30 = vmul.f32 %v3496_v19, %v3488_v62  ;;  %v1906_v31 = vpop.permute.xlu1 %1905 }
0x12e0   :  { %3279 = vmatprep.subr.msk.bf16.mxu0 %vm3696_vm6, %v3277_v29 }
0x12e1   :  { %3098 = vmatmul.mubr.msk.f32.vlgmr.msra.gmra.mrb[14].mxu0 %vm281_vm7, %v1817_v30 }
0x12e2   :  { %3104 = vmatprep.mubr.msk.f32.mxu0 %vm195_vm5, %v1906_v31 }
0x12e6   :  { %3282 = vmatpush3.bf16.xpose.msk.msra.mxu0 %vm3696_vm6, %v3277_v29 }
0x12ed   :  { %3105 = vmatmul.mubr.msk.f32.vlgmr.msra.gmra.mrb[16].mxu0 %vm195_vm5, %v1908_v32 }
0x13af   :  { %v4002_v33 = vpop.f32.mrb[12].mxu0 }
0x13b0   :  { %v4004_v34 = vpop.f32.mrb[13].mxu0 }
0x13b4   :  { %v4006_v35 = vpop.f32.mrb[14].mxu0 }
0x13b5   :  { %v4008_v37 = vpop.f32.mrb[15].mxu0 }
0x13c0   :  { %v3106_v57 = vpop.f32.mrb[16].mxu0 }
0x13c1   :  { %v1993_v58 = vadd.f32 %v3529_v41, %v3106_v57  ;;  %v1987_v42 = vpop.f32.mrb[17].mxu0 }
0x13c2   :  { %v1988_v46 = vadd.f32 %v3530_v45, %v1987_v42 }
0x13c3   :  { %v1999_v47 = vsel %vm281_vm7, %v1993_v58, -inf }
0x13c4   :  { %2000 = vmax.xlane.f32.xlu0 %v1999_v47  ;;  %v1996_v48 = vsel %vm281_vm7, %v1988_v46, -inf }
0x13c5   :  { %1997 = vmax.xlane.f32.xlu1 %v1996_v48 }
0x13d6   :  { %3411 = vrot.lane.b32.xlu1 %v3942_v12, %s3562_s18 }
0x13da   :  { %2105 = vrot.lane.b32.xlu1 %v3944_v13, %s3563_s19 }
0x13de   :  { %2107 = vrot.lane.b32.xlu1 %v3954_v15, %s3563_s19 }
0x1451   :  { %v2001_v49 = vpop.xlane.xlu0 %2000 }
0x1452   :  { %v2003_v9 = vsub.f32 %v1993_v58, %v2001_v49  ;;  %v1998_v8 = vpop.xlane.xlu1 %1997 }
0x1453   :  { %v2002_v16 = vsub.f32 %v1988_v46, %v1998_v8 }
0x1454   :  { %v2006_v50 = vmul.f32 1.442695, %v2003_v9 }
0x1455   :  { %v2004_v52 = vmul.f32 1.442695, %v2002_v16  ;;  %v2809_v16 = vld [vmem:[%s4178_s4 + $0x20] sm:$0xff] }
0x1456   :  { %3497 = vpow2.f32 %v2006_v50  ;;  %v3412_v55 = vpop.permute.xlu1 %3411  ;;  %v2811_v50 = vld [vmem:[%s4178_s4 + $0x30] sm:$0xff] }
0x1457   :  { %v3414_v59 = vunpack.i.h.bf16 %v3412_v55  ;;  %v3413_v60 = vunpack.i.l.bf16 %v3412_v55  ;;  %3499 = vpow2.f32 %v2004_v52  ;;  %v2812_v55 = vld [vmem:[%s4178_s4 + $0x38] sm:$0xff] }
0x1459   :  { %v3283_v61 = vpack.c.bf16 %v3414_v59, %v3413_v60  ;;  %v3301_v59 = vpack.c.bf16 %v2812_v55, %v2811_v50 }
0x145a   :  { %v2106_v39 = vpop.permute.xlu1 %2105 }
0x145b   :  { %3284 = vmatprep.subr.bf16.mxu1 %v3283_v61 }
0x145c   :  { %3286 = vmatpush3.bf16.msra.mxu1 %v3283_v61 }
0x145e   :  { %v2108_v21 = vpop.permute.xlu1 %2107 }
0x1460   :  { %v3498_v62 = vpop.eup %3497 }
0x1461   :  { %v2011_v13 = vsel %vm281_vm7, %v3498_v62, 0.0  ;;  %v3500_v63 = vpop.eup %3499 }
0x1462   :  { %2012 = vadd.xlane.f32.xlu0 %v2011_v13  ;;  %v2008_v15 = vsel %vm281_vm7, %v3500_v63, 0.0 }
0x1466   :  { %2009 = vadd.xlane.f32.xlu0 %v2008_v15 }
0x147c   :  { %3416 = vrot.lane.b32.xlu0 %v3942_v12, %s3564_s20 }
0x14ef   :  { %v2013_v2 = vpop.xlane.xlu0 %2012 }
0x14f0   :  { %3501 = vrcp.f32 %v2013_v2 }
0x14f3   :  { %v2010_v1 = vpop.xlane.xlu0 %2009 }
0x14f4   :  { %3503 = vrcp.f32 %v2010_v1 }
0x14f7   :  { %v3417_v4 = vpop.permute.xlu0 %3416 }
0x14f8   :  { %v3419_v0 = vunpack.i.h.bf16 %v3417_v4  ;;  %v3418_v5 = vunpack.i.l.bf16 %v3417_v4 }
0x14fa   :  { %v3287_v7 = vpack.c.bf16 %v3419_v0, %v3418_v5  ;;  %v3502_v10 = vpop.eup %3501 }
0x14fb   :  { %v2017_v20 = vmul.f32 %v3502_v10, %v3498_v62 }
0x14fc   :  { %3289 = vmatprep.subr.msk.bf16.mxu1 %vm3696_vm6, %v3287_v7 }
0x14fe   :  { %v3504_v11 = vpop.eup %3503 }
0x14ff   :  { %v2016_v18 = vmul.f32 %v3504_v11, %v3500_v63 }
0x1501   :  { %3111 = vmatprep.mubr.msk.f32.mxu1 %vm281_vm7, %v2016_v18 }
0x1502   :  { %3112 = vmatmul.mubr.msk.f32.vlgmr.msra.gmra.mrb[18].mxu1 %vm281_vm7, %v2017_v20 }
0x1503   :  { %3292 = vmatpush3.bf16.xpose.msk.msra.mxu1 %vm3696_vm6, %v3287_v7  ;;  %3118 = vmatprep.mubr.msk.f32.mxu1 %vm195_vm5, %v2106_v39 }
0x150a   :  { %3119 = vmatmul.mubr.msk.f32.vlgmr.msra.gmra.mrb[20].mxu1 %vm195_vm5, %v2108_v21 }
0x15d5   :  { %v3113_v22 = vpop.f32.mrb[18].mxu1 }
0x15d6   :  { %v2096_v23 = vpop.f32.mrb[19].mxu1 }
0x15dd   :  { %v3120_v53 = vpop.f32.mrb[20].mxu1 }
0x15de   :  { %v2193_v24 = vadd.f32 %v3529_v41, %v3120_v53  ;;  %v2187_v25 = vpop.f32.mrb[21].mxu1 }
0x15df   :  { %v2188_v54 = vadd.f32 %v3530_v45, %v2187_v25 }
0x15e0   :  { %v2199_v26 = vsel %vm281_vm7, %v2193_v24, -inf }
0x15e1   :  { %2200 = vmax.xlane.f32.xlu0 %v2199_v26  ;;  %v2196_v27 = vsel %vm281_vm7, %v2188_v54, -inf }
0x15e2   :  { %2197 = vmax.xlane.f32.xlu1 %v2196_v27 }
0x15f3   :  { %3421 = vrot.lane.b32.xlu1 %v3942_v12, %s3565_s21 }
0x15f7   :  { %2309 = vrot.lane.b32.xlu1 %v4006_v35, %s4193_s1 }
0x15fb   :  { %2315 = vrot.lane.b32.xlu1 %v2096_v23, %s4194_s15 }
0x15ff   :  { %2317 = vrot.lane.b32.xlu1 %v3113_v22, %s4194_s15 }
0x166e   :  { %v2201_v3 = vpop.xlane.xlu0 %2200 }
0x166f   :  { %v2203_v28 = vsub.f32 %v2193_v24, %v2201_v3  ;;  %v2198_v19 = vpop.xlane.xlu1 %2197 }
0x1670   :  { %v2202_v29 = vsub.f32 %v2188_v54, %v2198_v19  ;;  %v2815_v19 = vld [vmem:[%s4179_s5 + $0x20] sm:$0xff] }
0x1671   :  { %v2206_v30 = vmul.f32 1.442695, %v2203_v28 }
0x1672   :  { %v2204_v31 = vmul.f32 1.442695, %v2202_v29  ;;  %v2816_v29 = vld [vmem:[%s4179_s5 + $0x28] sm:$0xff] }
0x1673   :  { %v3422_v32 = vpop.permute.xlu1 %3421 }
0x1674   :  { %3505 = vpow2.f32 %v2204_v31  ;;  %v3424_v57 = vunpack.i.h.bf16 %v3422_v32  ;;  %v3423_v41 = vunpack.i.l.bf16 %v3422_v32  ;;  %v3305_v31 = vpack.c.bf16 %v2816_v29, %v2815_v19  ;;  %v2818_v32 = vld [vmem:[%s4179_s5 + $0x38] sm:$0xff] }
0x1675   :  { %3507 = vpow2.f32 %v2206_v30  ;;  %v2817_v30 = vld [vmem:[%s4179_s5 + $0x30] sm:$0xff] }
0x1676   :  { %v3293_v58 = vpack.c.bf16 %v3424_v57, %v3423_v41  ;;  %v3309_v57 = vpack.c.bf16 %v2818_v32, %v2817_v30  ;;  %3306 = vmatprep.subr.bf16.mxu1 %v3305_v31  ;;  %v2823_v41 = vld [vmem:[%s4181_s7 + $0x40] sm:$0xff] }
0x1677   :  { %v2310_v62 = vpop.permute.xlu1 %2309  ;;  %3308 = vmatpush3.bf16.msra.mxu1 %v3305_v31 }
0x1678   :  { %3294 = vmatprep.subr.bf16.mxu0 %v3293_v58  ;;  %v2330_v4 = vsel %vm195_vm5, %v4002_v33, %v2310_v62  ;;  %3310 = vmatprep.subr.bf16.mxu1 %v3309_v57 }
0x1679   :  { %3296 = vmatpush3.bf16.msra.mxu0 %v3293_v58  ;;  %v2824_v58 = vld [vmem:[%s4181_s7 + $0x48] sm:$0xff] }
0x167b   :  { %v2316_v13 = vpop.permute.xlu1 %2315  ;;  %3312 = vmatpush3.bf16.msra.mxu1 %v3309_v57 }
0x167e   :  { %v3506_v12 = vpop.eup %3505 }
0x167f   :  { %v2208_v35 = vsel %vm281_vm7, %v3506_v12, 0.0  ;;  %v3508_v42 = vpop.eup %3507  ;;  %v2318_v15 = vpop.permute.xlu1 %2317 }
0x1680   :  { %2209 = vadd.xlane.f32.xlu0 %v2208_v35  ;;  %v2211_v45 = vsel %vm281_vm7, %v3508_v42, 0.0  ;;  %v2332_v7 = vsel %vm281_vm7, %v2330_v4, %v2318_v15  ;;  %v3313_v35 = vpack.c.bf16 %v2824_v58, %v2823_v41 }
0x1684   :  { %2212 = vadd.xlane.f32.xlu0 %v2211_v45 }
0x169a   :  { %2307 = vrot.lane.b32.xlu0 %v4008_v37, %s4193_s1  ;;  %v2810_v37 = vld [vmem:[%s4178_s4 + $0x28] sm:$0xff]  ;;  %s3569_s4 = smov [#allocation2]  }
0x169b   :  { %v3297_v52 = vpack.c.bf16 %v2810_v37, %v2809_v16  ;;  %s2731_s25 = sshll.u32 %s3569_s4, 4  ;;  %s2732_s25 = int_to_ptr.vmem [resolvable:$true] %s2731_s25 }
0x169c   :  { %p3536_p1 = scmp.lt.s32.totalorder %s2732_s25, %s2732_s25 }
0x169d   :  { %3298 = vmatprep.subr.bf16.mxu0 %v3297_v52 }
0x170d   :  { %v2210_v46 = vpop.xlane.xlu0 %2209 }
0x170e   :  { %3509 = vrcp.f32 %v2210_v46  ;;  %v2827_v46 = vld [vmem:[%s4181_s7 + $0x60] sm:$0xff] }
0x1711   :  { %v2213_v47 = vpop.xlane.xlu0 %2212 }
0x1712   :  { %3511 = vrcp.f32 %v2213_v47  ;;  %v2828_v47 = vld [vmem:[%s4181_s7 + $0x68] sm:$0xff] }
0x1715   :  { %v2308_v63 = vpop.permute.xlu0 %2307 }
0x1716   :  { %v2329_v2 = vsel %vm195_vm5, %v4004_v34, %v2308_v63  ;;  %v2343_v34 = vrot.slane %v3931_v51, %v1028_v17 }
0x1717   :  { %v2331_v0 = vsel %vm281_vm7, %v2329_v2, %v2316_v13 }
0x1718   :  { %v3510_v48 = vpop.eup %3509 }
0x1719   :  { %v2216_v49 = vmul.f32 %v3510_v48, %v3506_v12  ;;  %v2825_v12 = vld [vmem:[%s4181_s7 + $0x50] sm:$0xff]  ;;  %v3321_v48 = vpack.c.bf16 %v2828_v47, %v2827_v46 }
0x171b   :  { %3125 = vmatprep.mubr.msk.f32.mxu0 %vm281_vm7, %v2216_v49 }
0x171c   :  { %v3512_v9 = vpop.eup %3511 }
0x171d   :  { %v2217_v8 = vmul.f32 %v3512_v9, %v3508_v42  ;;  %v2826_v42 = vld [vmem:[%s4181_s7 + $0x58] sm:$0xff] }
0x171e   :  { %v3317_v45 = vpack.c.bf16 %v2826_v42, %v2825_v12 }
0x171f   :  { %3126 = vmatmul.mubr.msk.f32.vlgmr.msra.gmra.mrb[18].mxu0 %vm281_vm7, %v2217_v8 }
0x1720   :  { %3300 = vmatpush3.bf16.msra.mxu0 %v3297_v52 }
0x1721   :  { %3302 = vmatprep.subr.bf16.mxu0 %v3301_v59 }
0x1724   :  { %3304 = vmatpush3.bf16.msra.mxu0 %v3301_v59 }
0x1725   :  { %3314 = vmatprep.subr.bf16.mxu0 %v3313_v35 }
0x17f2   :  { %v3127_v60 = vpop.f32.mrb[18].mxu0 }
0x17f3   :  { %2325 = vrot.lane.b32.xlu1 %v3127_v60, %s4195_s14  ;;  %v2296_v61 = vpop.f32.mrb[19].mxu0 }
0x17f4   :  { %2323 = vrot.lane.b32.xlu0 %v2296_v61, %s4195_s14 }
0x1865   :  { %v2326_v1 = vpop.permute.xlu1 %2325 }
0x1866   :  { %v2324_v5 = vpop.permute.xlu0 %2323  ;;  %v2334_v11 = vsel %vm1019_vm8, %v2332_v7, %v2326_v1  ;;  %v2470_v1 = vrot.slane %v3931_v51, %v1155_v43  ;;  %v2829_v43 = vld [vmem:[%s4181_s7 + $0x70] sm:$0xff] }
0x1867   :  { %v2333_v10 = vsel %vm1019_vm8, %v2331_v0, %v2324_v5  ;;  %v2476_v5 = vrot.slane %v3931_v51, %v1161_v44 }
0x1868   :  { %3136 = vmatprep.mubr.msk.f32.mxu0 %vm41_vm0, %v2333_v10 }
0x1869   :  { %3137 = vmatmul.mubr.msk.f32.vlgmr.msra.gmra.mrb[20].mxu0 %vm41_vm0, %v2334_v11 }
0x186a   :  { %3316 = vmatpush3.bf16.msra.mxu0 %v3313_v35 }
0x186b   :  { %3318 = vmatprep.subr.bf16.mxu0 %v3317_v45 }
0x186e   :  { %3320 = vmatpush3.bf16.msra.mxu0 %v3317_v45 }
0x186f   :  { %3322 = vmatprep.subr.bf16.mxu0 %v3321_v48 }
0x1872   :  { %3324 = vmatpush3.bf16.msra.mxu0 %v3321_v48 }
0x193c   :  { %v3138_v18 = vpop.f32.mrb[20].mxu0 }
0x193d   :  { %v2422_v20 = vadd.f32 %v3138_v18, %v2343_v34  ;;  %v2416_v33 = vpop.f32.mrb[21].mxu0 }
0x193e   :  { %v2417_v39 = vadd.f32 %v2416_v33, %v2343_v34  ;;  %v2830_v33 = vld [vmem:[%s4181_s7 + $0x78] sm:$0xff] }
0x193f   :  { %v4078_v21 = vadd.f32 %v2422_v20, %v3903_v14  ;;  %v3325_v44 = vpack.c.bf16 %v2830_v33, %v2829_v43 }
0x1940   :  { %v4081_v22 = vadd.f32 %v2417_v39, %v3906_v56  ;;  %v2820_v39 = vld [vmem:[%s4180_s6 + $0x1] ss:$0 sm:$0xff] }
0x1941   :  { %v2430_v23 = vsel %vm41_vm0, %v4078_v21, 0.0  ;;  %3326 = vmatprep.subr.bf16.mxu0 %v3325_v44 }
0x1942   :  { %2431 = vadd.xlane.f32.xlu1 %v2430_v23  ;;  %v2427_v53 = vsel %vm41_vm0, %v4081_v22, 0.0  ;;  %3328 = vmatpush3.bf16.msra.mxu0 %v3325_v44 }
0x1943   :  { %2428 = vadd.xlane.f32.xlu0 %v2427_v53 }
0x19cf   :  { %v2432_v24 = vpop.xlane.xlu1 %2431 }
0x19d0   :  { %v2434_v17 = vmul.f32 0.03125, %v2432_v24  ;;  %v2429_v25 = vpop.xlane.xlu0 %2428 }
0x19d1   :  { %v2433_v54 = vmul.f32 0.03125, %v2429_v25 }
0x19d2   :  { %v4088_v26 = vsub.f32 %v4078_v21, %v2434_v17 }
0x19d3   :  { %v2435_v14 = vsub.f32 %v4081_v22, %v2433_v54 }
0x19d4   :  { %v2438_v3 = vmul.f32 %v4088_v26, %v4088_v26 }
0x19d5   :  { %v2437_v27 = vmul.f32 %v2435_v14, %v2435_v14 }
0x19d6   :  { %v2442_v28 = vsel %vm41_vm0, %v2438_v3, 0.0 }
0x19d7   :  { %v2439_v56 = vsel %vm41_vm0, %v2437_v27, 0.0 }
0x19d8   :  { %2440 = vadd.xlane.f32.xlu0 %v2439_v56 }
0x19dc   :  { %2443 = vadd.xlane.f32.xlu0 %v2442_v28 }
0x1a65   :  { %v2441_v49 = vpop.xlane.xlu0 %2440 }
0x1a66   :  { %v2445_v9 = vmul.f32 0.032258064, %v2441_v49 }
0x1a68   :  { %3513 = vrsqrt.f32 %v2445_v9  ;;  %vm2449_vm3 = vcmp.eq.f32.partialorder %v2445_v9, inf  ;;  %v2452_v52 = vand.u32 2147483648, %v2445_v9  ;;  %vm2451_vm4 = vcmp.eq.f32.partialorder %v2445_v9, 0.0 }
0x1a69   :  { %v2444_v8 = vpop.xlane.xlu0 %2443 }
0x1a6a   :  { %v2446_v16 = vmul.f32 0.032258064, %v2444_v8 }
0x1a6c   :  { %3515 = vrsqrt.f32 %v2446_v16  ;;  %vm2456_vm5 = vcmp.eq.f32.partialorder %v2446_v16, inf  ;;  %v2459_v13 = vand.u32 2147483648, %v2446_v16  ;;  %vm2458_vm6 = vcmp.eq.f32.partialorder %v2446_v16, 0.0 }
0x1a72   :  { %v3514_v37 = vpop.eup %3513 }
0x1a73   :  { %v2448_v50 = vmul.f32 %v3514_v37, %v2445_v9 }
0x1a75   :  { %v2450_v55 = vsel %vm2449_vm3, %v2445_v9, %v2448_v50 }
0x1a76   :  { %v3516_v59 = vpop.eup %3515  ;;  %v2453_v60 = vsel %vm2451_vm4, %v2452_v52, %v2450_v55 }
0x1a77   :  { %v2461_v61 = vadd.f32 1e-06, %v2453_v60  ;;  %v2455_v62 = vmul.f32 %v3516_v59, %v2446_v16  ;;  %v2671_v60 = vld [vmem:[%s4183_s9] sm:$0x3]  ;;  %s3531_s9 = scalar_lea.vmem %s2732_s25, 256 }
0x1a78   :  { %p3532_p0 = scmp.ne.s32.totalorder %s2732_s25, %s3531_s9  ;;  %p3537_p2 = scmp.lt.s32.totalorder %s3531_s9, %s3531_s9 }
0x1a79   :  { %3517 = vrcp.f32 %v2461_v61  ;;  %v2457_v63 = vsel %vm2456_vm5, %v2446_v16, %v2455_v62  ;;  %v2715_v61 = vrot.slane %v2671_v60, %v3659_v38 }
0x1a7a   :  { %v2460_v15 = vsel %vm2458_vm6, %v2459_v13, %v2457_v63  ;;  %p3538_p3 = por %p3537_p2, %p3536_p1 }
0x1a7b   :  { %v2462_v2 = vadd.f32 1e-06, %v2460_v15  ;;  %v2721_v15 = vrot.slane %v2671_v60, %v3667_v40 }
0x1a7c   :  { %p3539_p4 = pnand %p3538_p3, %p3532_p0 }
0x1a7d   :  { %3519 = vrcp.f32 %v2462_v2 }
0x1a83   :  { %v3518_v4 = vpop.eup %3517 }
0x1a84   :  { %v2465_v0 = vmul.f32 %v3518_v4, %v2435_v14 }
0x1a86   :  { %v2471_v7 = vmul.f32 %v2470_v1, %v2465_v0 }
0x1a87   :  { %v3520_v10 = vpop.eup %3519 }
0x1a88   :  { %v2466_v11 = vmul.f32 %v3520_v10, %v4088_v26  ;;  %v2477_v34 = vadd.f32 %v2476_v5, %v2471_v7  ;;  %v2587_v26 = vrot.slane %v3931_v51, %v1269_v6 }
0x1a8a   :  { %v2472_v18 = vmul.f32 %v2470_v1, %v2466_v11  ;;  %3147 = vmatprep.mubr.msk.f32.mxu1 %vm41_vm0, %v2477_v34 }
0x1a8c   :  { %v2478_v20 = vadd.f32 %v2476_v5, %v2472_v18 }
0x1a8e   :  { %3148 = vmatmul.mubr.msk.f32.vlgmr.msra.gmra.mrb[22].mxu1 %vm41_vm0, %v2478_v20 }
0x1b61   :  { %v3149_v23 = vpop.f32.mrb[22].mxu1 }
0x1b62   :  { %v2570_v53 = vadd.f32 %v3149_v23, %v2820_v39  ;;  %v2564_v24 = vpop.f32.mrb[23].mxu1 }
0x1b63   :  { %v2565_v17 = vadd.f32 %v2820_v39, %v2564_v24 }
0x1b64   :  { %v2574_v54 = vmax.f32 %v2570_v53, 0.0 }
0x1b65   :  { %v2573_v25 = vmax.f32 %v2565_v17, 0.0 }
0x1b67   :  { %3166 = vmatprep.mubr.msk.f32.mxu0 %vm1271_vm13, %v2573_v25 }
0x1b68   :  { %3167 = vmatmul.mubr.msk.f32.vlgmr.msra.gmra.mrb[22].mxu0 %vm1271_vm13, %v2574_v54 }
0x1c3b   :  { %v3168_v14 = vpop.f32.mrb[22].mxu0 }
0x1c3c   :  { %v2666_v27 = vadd.f32 %v3168_v14, %v2587_v26  ;;  %v2660_v56 = vpop.f32.mrb[23].mxu0 }
0x1c3d   :  { %v2661_v3 = vadd.f32 %v2660_v56, %v2587_v26 }
0x1c3e   :  { %v2670_v28 = vadd.f32 %v2666_v27, %v4078_v21 }
0x1c3f   :  { %v2669_v19 = vadd.f32 %v2661_v3, %v4081_v22 }
0x1c40   :  { %v2675_v29 = vsel %vm41_vm0, %v2670_v28, 0.0 }
0x1c41   :  { %2676 = vadd.xlane.f32.xlu1 %v2675_v29  ;;  %v2672_v30 = vsel %vm41_vm0, %v2669_v19, 0.0 }
0x1c42   :  { %2673 = vadd.xlane.f32.xlu0 %v2672_v30 }
0x1cce   :  { %v2677_v31 = vpop.xlane.xlu1 %2676 }
0x1ccf   :  { %v2679_v32 = vmul.f32 0.03125, %v2677_v31  ;;  %v2674_v57 = vpop.xlane.xlu0 %2673 }
0x1cd0   :  { %v2678_v36 = vmul.f32 0.03125, %v2674_v57 }
0x1cd1   :  { %v2681_v41 = vsub.f32 %v2670_v28, %v2679_v32 }
0x1cd2   :  { %v2680_v6 = vsub.f32 %v2669_v19, %v2678_v36 }
0x1cd3   :  { %v2683_v51 = vmul.f32 %v2681_v41, %v2681_v41 }
0x1cd4   :  { %v2682_v58 = vmul.f32 %v2680_v6, %v2680_v6 }
0x1cd5   :  { %v2687_v12 = vsel %vm41_vm0, %v2683_v51, 0.0 }
0x1cd6   :  { %2688 = vadd.xlane.f32.xlu1 %v2687_v12  ;;  %v2684_v21 = vsel %vm41_vm0, %v2682_v58, 0.0 }
0x1cd7   :  { %2685 = vadd.xlane.f32.xlu0 %v2684_v21 }
0x1d63   :  { %v2689_v22 = vpop.xlane.xlu1 %2688 }
0x1d64   :  { %v2691_v35 = vmul.f32 0.032258064, %v2689_v22  ;;  %v2686_v42 = vpop.xlane.xlu0 %2685 }
0x1d65   :  { %v2690_v45 = vmul.f32 0.032258064, %v2686_v42 }
0x1d66   :  { %3521 = vrsqrt.f32 %v2691_v35  ;;  %vm2701_vm7 = vcmp.eq.f32.partialorder %v2691_v35, inf  ;;  %v2704_v49 = vand.u32 2147483648, %v2691_v35  ;;  %vm2703_vm8 = vcmp.eq.f32.partialorder %v2691_v35, 0.0 }
0x1d67   :  { %3523 = vrsqrt.f32 %v2690_v45  ;;  %vm2694_vm9 = vcmp.eq.f32.partialorder %v2690_v45, inf  ;;  %v2697_v16 = vand.u32 2147483648, %v2690_v45  ;;  %vm2696_vm10 = vcmp.eq.f32.partialorder %v2690_v45, 0.0 }
0x1d70   :  { %v3522_v46 = vpop.eup %3521 }
0x1d71   :  { %v3524_v47 = vpop.eup %3523  ;;  %v2700_v48 = vmul.f32 %v3522_v46, %v2691_v35 }
0x1d72   :  { %v2693_v9 = vmul.f32 %v3524_v47, %v2690_v45 }
0x1d73   :  { %v2702_v8 = vsel %vm2701_vm7, %v2691_v35, %v2700_v48 }
0x1d74   :  { %v2705_v37 = vsel %vm2703_vm8, %v2704_v49, %v2702_v8  ;;  %v2695_v50 = vsel %vm2694_vm9, %v2690_v45, %v2693_v9 }
0x1d75   :  { %v2707_v52 = vadd.f32 1e-06, %v2705_v37  ;;  %v2698_v55 = vsel %vm2696_vm10, %v2697_v16, %v2695_v50 }
0x1d76   :  { %v2706_v59 = vadd.f32 1e-06, %v2698_v55 }
0x1d77   :  { %3525 = vrcp.f32 %v2707_v52 }
0x1d78   :  { %3527 = vrcp.f32 %v2706_v59 }
0x1d81   :  { %v3526_v62 = vpop.eup %3525 }
0x1d82   :  { %v3528_v13 = vpop.eup %3527  ;;  %v2711_v63 = vmul.f32 %v3526_v62, %v2681_v41 }
0x1d83   :  { %v2710_v2 = vmul.f32 %v3528_v13, %v2680_v6 }
0x1d84   :  { %v2717_v1 = vmul.f32 %v2715_v61, %v2711_v63 }
0x1d85   :  { %v2716_v4 = vmul.f32 %v2715_v61, %v2710_v2 }
0x1d86   :  { %v2723_v0 = vadd.f32 %v2721_v15, %v2717_v1 }
0x1d87   :  { %v2722_v5 = vadd.f32 %v2721_v15, %v2716_v4 }
0x1d88   :  { %2725 = vst.msk [vmem:[#allocation2 + $0x8] sm:$0xff] %vm41_vm0, %v2723_v0 }
0x1d89   :  { %2724 = vst.msk [vmem:[#allocation2] sm:$0xff] %vm41_vm0, %v2722_v5 }
0x1d8a   :  { %3542 = shalt.err (!%p3539_p4)
}
0x1d8b   :  { %s3543_s23 = scalar_lea.hbm %s4184_s10, 256 }
0x1d8c   :  { %p3544_p5 = scmp.ne.s32.totalorder %s4184_s10, %s3543_s23  ;;  %p3547_p6 = scmp.lt.u32.totalorder %s3543_s23, %s4184_s10 }
0x1d8e   :  { %p3549_p7 = pnand %p3547_p6, %p3544_p5 }
0x1d90   :  { %3552 = shalt.err (!%p3549_p7)
}
0x1d91   :  { %s3570_s8 = smov 128  }
0x1d92   :  { %2737 = dma.vmem_to_hbm [thread:$0]  %s2732_s25, 256, %s4184_s10, [#allocation3], %s3570_s8, %s3570_s8, %s4193_s1  }
0x1d93   :  { %3553 = dma.done.wait [#allocation3], 256  }
0x1d94   :  { %3554 = vsyncadd [#allocation3], 4294967040 }
0x1d95   :  { %2741 = vsyncpa [#allocation3], 1 }

</bundles_post_ra>
